<compile_context>
chip_gen: v7x
topology: tpu7x:2x2x1
jax: 0.10.0
libtpu: 0.0.40
codegen_flags: <defaults>
</compile_context>

<pallas_src>
import jax
import jax.numpy as jnp
from jax.experimental import pallas as pl
from jax.experimental.pallas import tpu as pltpu


def _round_up(n, m):
    return ((n + m - 1) // m) * m


def _decoder_step_kernel(
    x_ref,     # (B, Hp)     embedded token (eval dropout = identity), wdt
    h_ref,     # (B, Hp)     previous hidden state (layer 0), f32
    enc_ref,   # (B, L, Hp)  encoder outputs, batch-major, wdt
    wih_ref,   # (Hp, 3Hp)   GRU W_ih^T, gates [r,z,n] at 128-aligned columns, wdt
    whh_ref,   # (Hp, 3Hp)   GRU W_hh^T, wdt
    bih_ref,   # (1, 3Hp)    f32
    bhh_ref,   # (1, 3Hp)    f32
    wc_ref,    # (2, Hp, Hp) concat Linear W^T split [rnn_output, context], wdt
    bc_ref,    # (1, Hp)     f32
    wo_ref,    # (Hp, TV)    out Linear W^T, current vocab tile (streamed), wdt
    bo_ref,    # (1, TV)     f32 (-1e30 in padded vocab columns)
    out_ref,   # (B, TV)     f32 logits, lane-dense tile store (pipelined writeback)
    lse_ref,   # (B, 1)      f32 log-sum-exp over the full vocab
    hid_ref,   # (B, Hp)     f32 new hidden state (VMEM-resident across the grid)
    c_sc,      # (B, Hp)     wdt scratch: concat-layer output
    m_sc,      # (B, 1)      f32 scratch: running max
    l_sc,      # (B, 1)      f32 scratch: running sum of exp
):
    f32 = jnp.float32
    wdt = x_ref.dtype
    hp = h_ref.shape[1]
    j = pl.program_id(0)

    # ---- step 0: GRU cell + attention + concat Linear (reused by all tiles) --
    @pl.when(j == 0)
    def _():
        # GRU (PyTorch gate order r, z, n): two fused (B,Hp)x(Hp,3Hp) matmuls.
        h_prev = h_ref[...]
        gi = jnp.dot(x_ref[...], wih_ref[...],
                     preferred_element_type=f32) + bih_ref[...]
        gh = jnp.dot(h_prev.astype(wdt), whh_ref[...],
                     preferred_element_type=f32) + bhh_ref[...]
        r = jax.nn.sigmoid(gi[:, :hp] + gh[:, :hp])
        z = jax.nn.sigmoid(gi[:, hp:2 * hp] + gh[:, hp:2 * hp])
        n = jnp.tanh(gi[:, 2 * hp:] + r * gh[:, 2 * hp:])
        h_new = (1.0 - z) * n + z * h_prev                      # (B, Hp) f32
        hid_ref[...] = h_new

        # Luong "dot" attention with query length 1 on the VPU/XLU (MXU stays
        # free for the projections; B serialized M=1 matmuls avoided).
        enc = enc_ref[...].astype(f32)                          # (B, L, Hp)
        scores = jnp.sum(enc * h_new[:, None, :], axis=2)       # (B, L)
        sm = jnp.max(scores, axis=1, keepdims=True)
        se = jnp.exp(scores - sm)
        attn = se * pl.reciprocal(jnp.sum(se, axis=1, keepdims=True), approx=True)
        context = jnp.sum(enc * attn[:, :, None], axis=1)       # (B, Hp) f32

        # concat Linear without the lane concat, then tanh.
        c = jnp.tanh(
            jnp.dot(h_new.astype(wdt), wc_ref[0], preferred_element_type=f32)
            + jnp.dot(context.astype(wdt), wc_ref[1], preferred_element_type=f32)
            + bc_ref[...])                                       # (B, Hp) f32
        c_sc[...] = c.astype(wdt)

        m_sc[...] = jnp.full_like(m_sc, -jnp.inf)
        l_sc[...] = jnp.zeros_like(l_sc)

    # ---- every step: output-projection tile + online softmax statistics -----
    logits = (jnp.dot(c_sc[...], wo_ref[...], preferred_element_type=f32)
              + bo_ref[...])                                     # (B, TV) f32
    out_ref[...] = logits

    m_prev = m_sc[...]
    m_new = jnp.maximum(m_prev, jnp.max(logits, axis=1, keepdims=True))
    l_sc[...] = (l_sc[...] * jnp.exp(m_prev - m_new)
                 + jnp.sum(jnp.exp(logits - m_new), axis=1, keepdims=True))
    m_sc[...] = m_new

    @pl.when(j == pl.num_programs(0) - 1)
    def _():
        lse_ref[...] = m_sc[...] + jnp.log(l_sc[...])


def prepare_decoder_params(raw, compute_dtype=jnp.bfloat16, vocab_tile=512):
    """Repack raw (PyTorch-layout, already-transposed) params for the kernel.

    - H padded to a multiple of 128 (zero pad rows/cols; gates 128-aligned).
    - Vocab padded to a multiple of the vocab tile (zero weights, -1e30 bias).
    - Weights / embeddings stored in `compute_dtype` (bf16 default everywhere);
      biases stay f32.
    """
    assert vocab_tile % 128 == 0
    f32 = jnp.float32
    wdt = compute_dtype

    H = raw["w_ih_t"].shape[0]
    V = raw["w_out_t"].shape[1]
    n_emb = raw["embedding"].shape[0]
    Hp = _round_up(H, 128)
    v128 = _round_up(V, 128)
    TV = min(vocab_tile, v128)
    Vp = _round_up(V, TV)

    def pad_gru_w(w):  # (H, 3H) -> (Hp, 3Hp), gates [r,z,n] at 128-aligned cols
        out = jnp.zeros((Hp, 3 * Hp), f32)
        for g in range(3):
            out = out.at[:H, g * Hp:g * Hp + H].set(w[:, g * H:(g + 1) * H])
        return out.astype(wdt)

    def pad_gru_b(b):  # (1, 3H) -> (1, 3Hp), f32
        out = jnp.zeros((1, 3 * Hp), f32)
        for g in range(3):
            out = out.at[:, g * Hp:g * Hp + H].set(b[:, g * H:(g + 1) * H])
        return out

    emb = jnp.zeros((n_emb, Hp), f32).at[:, :H].set(raw["embedding"]).astype(wdt)

    wc = jnp.zeros((2, Hp, Hp), f32)
    wc = wc.at[0, :H, :H].set(raw["w_concat_t"][:H])
    wc = wc.at[1, :H, :H].set(raw["w_concat_t"][H:])
    bc = jnp.zeros((1, Hp), f32).at[:, :H].set(raw["b_concat"])

    wo = jnp.zeros((Hp, Vp), f32).at[:H, :V].set(raw["w_out_t"]).astype(wdt)
    bo = jnp.full((1, Vp), -1e30, f32).at[:, :V].set(raw["b_out"].astype(f32))

    return dict(
        emb=emb,
        wih=pad_gru_w(raw["w_ih_t"]), whh=pad_gru_w(raw["w_hh_t"]),
        bih=pad_gru_b(raw["b_ih"]), bhh=pad_gru_b(raw["b_hh"]),
        wc=wc.astype(wdt), bc=bc, wo=wo, bo=bo,
        hidden_size=H, hidden_pad=Hp,
        output_size=V, vocab_pad=Vp, vocab_tile=TV,
        compute_dtype=wdt,
    )


def prepare_encoder_outputs(encoder_outputs, p):
    """(L, B, H) -> (B, L, H_pad) in compute dtype.  Run ONCE per sequence."""
    H, Hp = p["hidden_size"], p["hidden_pad"]
    enc = jnp.transpose(encoder_outputs, (1, 0, 2)).astype(p["compute_dtype"])
    return jnp.pad(enc, ((0, 0), (0, 0), (0, Hp - H)))


def luong_attn_decoder_step(input_step, last_hidden, enc_prepared, p):
    """One forward step of LuongAttnDecoderRNN (attn_model='dot', n_layers=1, eval).

    `enc_prepared` must come from `prepare_encoder_outputs` (done once per
    sequence, not once per decoded token).
    """
    B = input_step.shape[1]
    H, Hp = p["hidden_size"], p["hidden_pad"]
    V, Vp, TV = p["output_size"], p["vocab_pad"], p["vocab_tile"]
    wdt = p["compute_dtype"]
    f32 = jnp.float32
    nt = Vp // TV

    # Embedding row gather stays in XLA (only B rows; eval dropout = identity).
    ids = input_step.reshape(B).astype(jnp.int32)
    x = jnp.take(p["emb"], ids, axis=0)                              # (B, Hp) wdt
    h_prev = jnp.pad(last_hidden[0].astype(f32), ((0, 0), (0, Hp - H)))

    grid_spec = pltpu.PrefetchScalarGridSpec(
        num_scalar_prefetch=0,
        grid=(nt,),
        in_specs=[
            pl.BlockSpec((B, Hp), lambda j: (0, 0)),                 # x
            pl.BlockSpec((B, Hp), lambda j: (0, 0)),                 # h_prev
            pl.BlockSpec(enc_prepared.shape, lambda j: (0, 0, 0)),   # enc (resident)
            pl.BlockSpec((Hp, 3 * Hp), lambda j: (0, 0)),            # wih
            pl.BlockSpec((Hp, 3 * Hp), lambda j: (0, 0)),            # whh
            pl.BlockSpec((1, 3 * Hp), lambda j: (0, 0)),             # bih
            pl.BlockSpec((1, 3 * Hp), lambda j: (0, 0)),             # bhh
            pl.BlockSpec((2, Hp, Hp), lambda j: (0, 0, 0)),          # wc
            pl.BlockSpec((1, Hp), lambda j: (0, 0)),                 # bc
            pl.BlockSpec((Hp, TV), lambda j: (0, j)),                # wo (streamed)
            pl.BlockSpec((1, TV), lambda j: (0, j)),                 # bo (streamed)
        ],
        out_specs=(
            pl.BlockSpec((B, TV), lambda j: (0, j)),                 # logits tiles
            pl.BlockSpec((B, 1), lambda j: (0, 0)),                  # log-sum-exp
            pl.BlockSpec((B, Hp), lambda j: (0, 0)),                 # new hidden
        ),
        scratch_shapes=[
            pltpu.VMEM((B, Hp), wdt),                                # concat output
            pltpu.VMEM((B, 1), jnp.float32),                         # running max
            pltpu.VMEM((B, 1), jnp.float32),                         # running sum
        ],
    )

    logits, lse, h_new = pl.pallas_call(
        _decoder_step_kernel,
        grid_spec=grid_spec,
        out_shape=(
            jax.ShapeDtypeStruct((B, Vp), jnp.float32),
            jax.ShapeDtypeStruct((B, 1), jnp.float32),
            jax.ShapeDtypeStruct((B, Hp), jnp.float32),
        ),
        compiler_params=pltpu.CompilerParams(
            dimension_semantics=("arbitrary",),     # online-softmax scratch carried
            vmem_limit_bytes=32 * 1024 * 1024),     # v5e default is only 16 MiB
    )(x, h_prev, enc_prepared,
      p["wih"], p["whh"], p["bih"], p["bhh"],
      p["wc"], p["bc"], p["wo"], p["bo"])

    # Exact softmax finalization (tiny fused epilogue; padded vocab columns and
    # padded hidden lanes sliced away).
    probs = jnp.exp(logits[:, :V] - lse)
    return probs, h_new[None, :, :H]


def _reference_step(input_step, last_hidden, encoder_outputs, raw):
    """Pure-JAX reference mirroring the PyTorch forward, for validation."""
    x = raw["embedding"][input_step[0]]
    h = last_hidden[0]
    H = h.shape[1]
    gi = x @ raw["w_ih_t"] + raw["b_ih"]
    gh = h @ raw["w_hh_t"] + raw["b_hh"]
    r = jax.nn.sigmoid(gi[:, :H] + gh[:, :H])
    z = jax.nn.sigmoid(gi[:, H:2 * H] + gh[:, H:2 * H])
    n = jnp.tanh(gi[:, 2 * H:] + r * gh[:, 2 * H:])
    h_new = (1.0 - z) * n + z * h
    scores = jnp.sum(encoder_outputs * h_new[None], axis=2)             # (L, B)
    attn = jax.nn.softmax(scores.T, axis=1)                             # (B, L)
    context = jnp.einsum("bl,lbh->bh", attn, encoder_outputs)
    c = jnp.tanh(jnp.concatenate([h_new, context], 1) @ raw["w_concat_t"]
                 + raw["b_concat"])
    out = jax.nn.softmax(c @ raw["w_out_t"] + raw["b_out"], axis=1)
    return out, h_new[None]


if __name__ == "__main__":
    # Batch >= 8 fills f32 sublanes; V=300 spans multiple 128-wide vocab tiles
    # so the online-softmax grid path is actually exercised.
    B, H, L, V = 8, 32, 8, 300

    key = jax.random.PRNGKey(0)
    ks = jax.random.split(key, 12)
    scale = 0.1

    raw = {
        "embedding":  scale * jax.random.normal(ks[0], (V, H), jnp.float32),
        "w_ih_t":     scale * jax.random.normal(ks[1], (H, 3 * H), jnp.float32),
        "w_hh_t":     scale * jax.random.normal(ks[2], (H, 3 * H), jnp.float32),
        "b_ih":       scale * jax.random.normal(ks[3], (1, 3 * H), jnp.float32),
        "b_hh":       scale * jax.random.normal(ks[4], (1, 3 * H), jnp.float32),
        "w_concat_t": scale * jax.random.normal(ks[5], (2 * H, H), jnp.float32),
        "b_concat":   scale * jax.random.normal(ks[6], (1, H), jnp.float32),
        "w_out_t":    scale * jax.random.normal(ks[7], (H, V), jnp.float32),
        "b_out":      scale * jax.random.normal(ks[8], (1, V), jnp.float32),
    }

    input_step = jax.random.randint(ks[9], (1, B), 0, V, dtype=jnp.int32)
    last_hidden = scale * jax.random.normal(ks[10], (1, B, H), jnp.float32)
    encoder_outputs = scale * jax.random.normal(ks[11], (L, B, H), jnp.float32)

    ref_out, ref_hidden = _reference_step(input_step, last_hidden,
                                          encoder_outputs, raw)

    # f32 storage path, single vocab tile (correctness baseline).
    params_f32 = prepare_decoder_params(raw, compute_dtype=jnp.float32,
                                        vocab_tile=512)
    enc_f32 = prepare_encoder_outputs(encoder_outputs, params_f32)
    out, hidden = luong_attn_decoder_step(input_step, last_hidden,
                                          enc_f32, params_f32)
    jax.block_until_ready((out, hidden))
    assert out.shape == (B, V) and hidden.shape == (1, B, H)
    assert jnp.allclose(out, ref_out, rtol=5e-3, atol=1e-4)
    assert jnp.allclose(hidden, ref_hidden, rtol=1e-3, atol=1e-5)

    # Default bf16 storage path (recommended on every generation), three vocab
    # tiles so the streamed wo + online log-sum-exp path is exercised.
    params_bf16 = prepare_decoder_params(raw, vocab_tile=128)
    enc_bf16 = prepare_encoder_outputs(encoder_outputs, params_bf16)
    out_bf, hidden_bf = luong_attn_decoder_step(input_step, last_hidden,
                                                enc_bf16, params_bf16)
    jax.block_until_ready((out_bf, hidden_bf))
    assert jnp.allclose(out_bf, ref_out, atol=5e-2)
    assert jnp.allclose(hidden_bf, ref_hidden, atol=5e-2)

    print("KERNEL_OK")
</pallas_src>

<mosaic_0001>
module attributes {stable_mosaic.version = 11 : i64} {
  func.func @_decoder_step_kernel(%arg0: i32, %arg1: memref<8x128xf32, #tpu.memory_space<vmem>>, %arg2: memref<8x128xf32, #tpu.memory_space<vmem>>, %arg3: memref<8x8x128xf32, #tpu.memory_space<vmem>>, %arg4: memref<128x384xf32, #tpu.memory_space<vmem>>, %arg5: memref<128x384xf32, #tpu.memory_space<vmem>>, %arg6: memref<1x384xf32, #tpu.memory_space<vmem>>, %arg7: memref<1x384xf32, #tpu.memory_space<vmem>>, %arg8: memref<2x128x128xf32, #tpu.memory_space<vmem>>, %arg9: memref<1x128xf32, #tpu.memory_space<vmem>>, %arg10: memref<128x384xf32, #tpu.memory_space<vmem>>, %arg11: memref<1x384xf32, #tpu.memory_space<vmem>>, %arg12: memref<8x384xf32, #tpu.memory_space<vmem>>, %arg13: memref<8x1xf32, #tpu.memory_space<vmem>>, %arg14: memref<8x128xf32, #tpu.memory_space<vmem>>, %arg15: memref<8x128xf32, #tpu.memory_space<vmem>>, %arg16: memref<8x1xf32, #tpu.memory_space<vmem>>, %arg17: memref<8x1xf32, #tpu.memory_space<vmem>>) attributes {dimension_semantics = [#tpu.dimension_semantics<arbitrary>], iteration_bounds = array<i64: 1>, scalar_prefetch = 0 : i64, scratch_operands = 3 : i64, tpu.core_type = #tpu.core_type<tc>, window_params = [{pipeline_mode = #tpu.pipeline_mode<synchronous>, transform_indices = @transform_0, window_bounds = array<i64: 8, 128>}, {pipeline_mode = #tpu.pipeline_mode<synchronous>, transform_indices = @transform_1, window_bounds = array<i64: 8, 128>}, {pipeline_mode = #tpu.pipeline_mode<synchronous>, transform_indices = @transform_2, window_bounds = array<i64: 8, 8, 128>}, {pipeline_mode = #tpu.pipeline_mode<synchronous>, transform_indices = @transform_3, window_bounds = array<i64: 128, 384>}, {pipeline_mode = #tpu.pipeline_mode<synchronous>, transform_indices = @transform_4, window_bounds = array<i64: 128, 384>}, {pipeline_mode = #tpu.pipeline_mode<synchronous>, transform_indices = @transform_5, window_bounds = array<i64: 1, 384>}, {pipeline_mode = #tpu.pipeline_mode<synchronous>, transform_indices = @transform_6, window_bounds = array<i64: 1, 384>}, {pipeline_mode = #tpu.pipeline_mode<synchronous>, transform_indices = @transform_7, window_bounds = array<i64: 2, 128, 128>}, {pipeline_mode = #tpu.pipeline_mode<synchronous>, transform_indices = @transform_8, window_bounds = array<i64: 1, 128>}, {transform_indices = @transform_9, window_bounds = array<i64: 128, 384>}, {transform_indices = @transform_10, window_bounds = array<i64: 1, 384>}, {transform_indices = @transform_11, window_bounds = array<i64: 8, 384>}, {pipeline_mode = #tpu.pipeline_mode<synchronous>, transform_indices = @transform_12, window_bounds = array<i64: 8, 1>}, {pipeline_mode = #tpu.pipeline_mode<synchronous>, transform_indices = @transform_13, window_bounds = array<i64: 8, 128>}]} {
    %c0_i32 = arith.constant 0 : i32
    %0 = arith.cmpi eq, %arg0, %c0_i32 : i32
    %1 = arith.extui %0 : i1 to i32
    %c0_i32_0 = arith.constant 0 : i32
    %2 = arith.cmpi ne, %1, %c0_i32_0 : i32
    scf.if %2 {
      %c0_20 = arith.constant 0 : index
      %c0_21 = arith.constant 0 : index
      %29 = vector.load %arg2[%c0_20, %c0_21] : memref<8x128xf32, #tpu.memory_space<vmem>>, vector<8x128xf32>
      %c0_22 = arith.constant 0 : index
      %c0_23 = arith.constant 0 : index
      %30 = vector.load %arg1[%c0_22, %c0_23] : memref<8x128xf32, #tpu.memory_space<vmem>>, vector<8x128xf32>
      %c0_24 = arith.constant 0 : index
      %c0_25 = arith.constant 0 : index
      %31 = vector.load %arg4[%c0_24, %c0_25] : memref<128x384xf32, #tpu.memory_space<vmem>>, vector<128x384xf32>
      %cst_26 = arith.constant dense<0.000000e+00> : vector<8x384xf32>
      %32 = tpu.matmul %30, %31, %cst_26 {dimension_numbers = #tpu.dot_dimension_numbers<[1], [0], [0], [1], [0, 0, 1, 1], [], []>} : vector<8x128xf32>, vector<128x384xf32>, vector<8x384xf32> -> vector<8x384xf32>
      %c0_27 = arith.constant 0 : index
      %c0_28 = arith.constant 0 : index
      %33 = vector.load %arg6[%c0_27, %c0_28] : memref<1x384xf32, #tpu.memory_space<vmem>>, vector<1x384xf32>
      %34 = vector.broadcast %33 : vector<1x384xf32> to vector<8x384xf32>
      %35 = arith.addf %32, %34 : vector<8x384xf32>
      %c0_29 = arith.constant 0 : index
      %c0_30 = arith.constant 0 : index
      %36 = vector.load %arg5[%c0_29, %c0_30] : memref<128x384xf32, #tpu.memory_space<vmem>>, vector<128x384xf32>
      %cst_31 = arith.constant dense<0.000000e+00> : vector<8x384xf32>
      %37 = tpu.matmul %29, %36, %cst_31 {dimension_numbers = #tpu.dot_dimension_numbers<[1], [0], [0], [1], [0, 0, 1, 1], [], []>} : vector<8x128xf32>, vector<128x384xf32>, vector<8x384xf32> -> vector<8x384xf32>
      %c0_32 = arith.constant 0 : index
      %c0_33 = arith.constant 0 : index
      %38 = vector.load %arg7[%c0_32, %c0_33] : memref<1x384xf32, #tpu.memory_space<vmem>>, vector<1x384xf32>
      %39 = vector.broadcast %38 : vector<1x384xf32> to vector<8x384xf32>
      %40 = arith.addf %37, %39 : vector<8x384xf32>
      %41 = vector.extract_strided_slice %35 {offsets = [0, 0], sizes = [8, 128], strides = [1, 1]} : vector<8x384xf32> to vector<8x128xf32>
      %42 = vector.extract_strided_slice %40 {offsets = [0, 0], sizes = [8, 128], strides = [1, 1]} : vector<8x384xf32> to vector<8x128xf32>
      %43 = arith.addf %41, %42 : vector<8x128xf32>
      %44 = arith.negf %43 : vector<8x128xf32>
      %45 = math.exp %44 : vector<8x128xf32>
      %cst_34 = arith.constant 1.000000e+00 : f32
      %46 = vector.broadcast %cst_34 : f32 to vector<8x128xf32>
      %47 = arith.addf %46, %45 : vector<8x128xf32>
      %48 = arith.divf %46, %47 : vector<8x128xf32>
      %49 = vector.extract_strided_slice %35 {offsets = [0, 128], sizes = [8, 128], strides = [1, 1]} : vector<8x384xf32> to vector<8x128xf32>
      %50 = vector.extract_strided_slice %40 {offsets = [0, 128], sizes = [8, 128], strides = [1, 1]} : vector<8x384xf32> to vector<8x128xf32>
      %51 = arith.addf %49, %50 : vector<8x128xf32>
      %52 = arith.negf %51 : vector<8x128xf32>
      %53 = math.exp %52 : vector<8x128xf32>
      %cst_35 = arith.constant 1.000000e+00 : f32
      %54 = vector.broadcast %cst_35 : f32 to vector<8x128xf32>
      %55 = arith.addf %54, %53 : vector<8x128xf32>
      %56 = arith.divf %54, %55 : vector<8x128xf32>
      %57 = vector.extract_strided_slice %35 {offsets = [0, 256], sizes = [8, 128], strides = [1, 1]} : vector<8x384xf32> to vector<8x128xf32>
      %58 = vector.extract_strided_slice %40 {offsets = [0, 256], sizes = [8, 128], strides = [1, 1]} : vector<8x384xf32> to vector<8x128xf32>
      %59 = arith.mulf %48, %58 : vector<8x128xf32>
      %60 = arith.addf %57, %59 : vector<8x128xf32>
      %61 = math.tanh %60 : vector<8x128xf32>
      %cst_36 = arith.constant 1.000000e+00 : f32
      %62 = vector.broadcast %cst_36 : f32 to vector<8x128xf32>
      %63 = arith.subf %62, %56 : vector<8x128xf32>
      %64 = arith.mulf %63, %61 : vector<8x128xf32>
      %65 = arith.mulf %56, %29 : vector<8x128xf32>
      %66 = arith.addf %64, %65 : vector<8x128xf32>
      %c0_37 = arith.constant 0 : index
      %c0_38 = arith.constant 0 : index
      %67 = vector.load %arg14[%c0_37, %c0_38] : memref<8x128xf32, #tpu.memory_space<vmem>>, vector<8x128xf32>
      tpu.vector_store %arg14[%c0_37, %c0_38], %66 {strides = array<i32>} : memref<8x128xf32, #tpu.memory_space<vmem>>, vector<8x128xf32>,
      %c0_39 = arith.constant 0 : index
      %c0_40 = arith.constant 0 : index
      %c0_41 = arith.constant 0 : index
      %68 = vector.load %arg3[%c0_39, %c0_40, %c0_41] : memref<8x8x128xf32, #tpu.memory_space<vmem>>, vector<8x8x128xf32>
      %69 = vector.shape_cast %66 : vector<8x128xf32> to vector<8x1x128xf32>
      %70 = vector.broadcast %69 : vector<8x1x128xf32> to vector<8x8x128xf32>
      %71 = arith.mulf %68, %70 : vector<8x8x128xf32>
      %cst_42 = arith.constant dense<0.000000e+00> : vector<8x8xf32>
      %72 = vector.multi_reduction <add>, %71, %cst_42 [2] : vector<8x8x128xf32> to vector<8x8xf32>
      %cst_43 = arith.constant dense<0xFF800000> : vector<8xf32>
      %73 = vector.multi_reduction <maximumf>, %72, %cst_43 [1] : vector<8x8xf32> to vector<8xf32>
      %74 = vector.shape_cast %73 : vector<8xf32> to vector<8x1xf32>
      %75 = vector.broadcast %74 : vector<8x1xf32> to vector<8x8xf32>
      %76 = arith.subf %72, %75 : vector<8x8xf32>
      %77 = math.exp %76 : vector<8x8xf32>
      %cst_44 = arith.constant dense<0.000000e+00> : vector<8xf32>
      %78 = vector.multi_reduction <add>, %77, %cst_44 [1] : vector<8x8xf32> to vector<8xf32>
      %79 = vector.shape_cast %78 : vector<8xf32> to vector<8x1xf32>
      %80 = tpu.reciprocal %79 {approx = true} : vector<8x1xf32> -> vector<8x1xf32>
      %81 = vector.broadcast %80 : vector<8x1xf32> to vector<8x8xf32>
      %82 = arith.mulf %77, %81 : vector<8x8xf32>
      %83 = vector.shape_cast %82 : vector<8x8xf32> to vector<8x8x1xf32>
      %84 = vector.broadcast %83 : vector<8x8x1xf32> to vector<8x8x128xf32>
      %85 = arith.mulf %68, %84 : vector<8x8x128xf32>
      %cst_45 = arith.constant dense<0.000000e+00> : vector<8x128xf32>
      %86 = vector.multi_reduction <add>, %85, %cst_45 [1] : vector<8x8x128xf32> to vector<8x128xf32>
      %c0_46 = arith.constant 0 : index
      %c0_47 = arith.constant 0 : index
      %c0_48 = arith.constant 0 : index
      %87 = vector.load %arg8[%c0_46, %c0_47, %c0_48] : memref<2x128x128xf32, #tpu.memory_space<vmem>>, vector<1x128x128xf32>
      %88 = vector.shape_cast %87 : vector<1x128x128xf32> to vector<128x128xf32>
      %cst_49 = arith.constant dense<0.000000e+00> : vector<8x128xf32>
      %89 = tpu.matmul %66, %88, %cst_49 {dimension_numbers = #tpu.dot_dimension_numbers<[1], [0], [0], [1], [0, 0, 1, 1], [], []>} : vector<8x128xf32>, vector<128x128xf32>, vector<8x128xf32> -> vector<8x128xf32>
      %c1 = arith.constant 1 : index
      %c0_50 = arith.constant 0 : index
      %c0_51 = arith.constant 0 : index
      %90 = vector.load %arg8[%c1, %c0_50, %c0_51] : memref<2x128x128xf32, #tpu.memory_space<vmem>>, vector<1x128x128xf32>
      %91 = vector.shape_cast %90 : vector<1x128x128xf32> to vector<128x128xf32>
      %cst_52 = arith.constant dense<0.000000e+00> : vector<8x128xf32>
      %92 = tpu.matmul %86, %91, %cst_52 {dimension_numbers = #tpu.dot_dimension_numbers<[1], [0], [0], [1], [0, 0, 1, 1], [], []>} : vector<8x128xf32>, vector<128x128xf32>, vector<8x128xf32> -> vector<8x128xf32>
      %93 = arith.addf %89, %92 : vector<8x128xf32>
      %c0_53 = arith.constant 0 : index
      %c0_54 = arith.constant 0 : index
      %94 = vector.load %arg9[%c0_53, %c0_54] : memref<1x128xf32, #tpu.memory_space<vmem>>, vector<1x128xf32>
      %95 = vector.broadcast %94 : vector<1x128xf32> to vector<8x128xf32>
      %96 = arith.addf %93, %95 : vector<8x128xf32>
      %97 = math.tanh %96 : vector<8x128xf32>
      %c0_55 = arith.constant 0 : index
      %c0_56 = arith.constant 0 : index
      %98 = vector.load %arg15[%c0_55, %c0_56] : memref<8x128xf32, #tpu.memory_space<vmem>>, vector<8x128xf32>
      tpu.vector_store %arg15[%c0_55, %c0_56], %97 {strides = array<i32>} : memref<8x128xf32, #tpu.memory_space<vmem>>, vector<8x128xf32>,
      %cst_57 = arith.constant 0xFF800000 : f32
      %99 = vector.broadcast %cst_57 : f32 to vector<8x1xf32>
      %c0_58 = arith.constant 0 : index
      %c0_59 = arith.constant 0 : index
      %100 = vector.load %arg16[%c0_58, %c0_59] : memref<8x1xf32, #tpu.memory_space<vmem>>, vector<8x1xf32>
      tpu.vector_store %arg16[%c0_58, %c0_59], %99 {strides = array<i32>} : memref<8x1xf32, #tpu.memory_space<vmem>>, vector<8x1xf32>,
      %cst_60 = arith.constant 0.000000e+00 : f32
      %101 = vector.broadcast %cst_60 : f32 to vector<8x1xf32>
      %c0_61 = arith.constant 0 : index
      %c0_62 = arith.constant 0 : index
      %102 = vector.load %arg17[%c0_61, %c0_62] : memref<8x1xf32, #tpu.memory_space<vmem>>, vector<8x1xf32>
      tpu.vector_store %arg17[%c0_61, %c0_62], %101 {strides = array<i32>} : memref<8x1xf32, #tpu.memory_space<vmem>>, vector<8x1xf32>,
    } else {
    }
    %c0 = arith.constant 0 : index
    %c0_1 = arith.constant 0 : index
    %3 = vector.load %arg15[%c0, %c0_1] : memref<8x128xf32, #tpu.memory_space<vmem>>, vector<8x128xf32>
    %c0_2 = arith.constant 0 : index
    %c0_3 = arith.constant 0 : index
    %4 = vector.load %arg10[%c0_2, %c0_3] : memref<128x384xf32, #tpu.memory_space<vmem>>, vector<128x384xf32>
    %cst = arith.constant dense<0.000000e+00> : vector<8x384xf32>
    %5 = tpu.matmul %3, %4, %cst {dimension_numbers = #tpu.dot_dimension_numbers<[1], [0], [0], [1], [0, 0, 1, 1], [], []>} : vector<8x128xf32>, vector<128x384xf32>, vector<8x384xf32> -> vector<8x384xf32>
    %c0_4 = arith.constant 0 : index
    %c0_5 = arith.constant 0 : index
    %6 = vector.load %arg11[%c0_4, %c0_5] : memref<1x384xf32, #tpu.memory_space<vmem>>, vector<1x384xf32>
    %7 = vector.broadcast %6 : vector<1x384xf32> to vector<8x384xf32>
    %8 = arith.addf %5, %7 : vector<8x384xf32>
    %c0_6 = arith.constant 0 : index
    %c0_7 = arith.constant 0 : index
    %9 = vector.load %arg12[%c0_6, %c0_7] : memref<8x384xf32, #tpu.memory_space<vmem>>, vector<8x384xf32>
    tpu.vector_store %arg12[%c0_6, %c0_7], %8 {strides = array<i32>} : memref<8x384xf32, #tpu.memory_space<vmem>>, vector<8x384xf32>,
    %c0_8 = arith.constant 0 : index
    %c0_9 = arith.constant 0 : index
    %10 = vector.load %arg16[%c0_8, %c0_9] : memref<8x1xf32, #tpu.memory_space<vmem>>, vector<8x1xf32>
    %cst_10 = arith.constant dense<0xFF800000> : vector<8xf32>
    %11 = vector.multi_reduction <maximumf>, %8, %cst_10 [1] : vector<8x384xf32> to vector<8xf32>
    %12 = vector.shape_cast %11 : vector<8xf32> to vector<8x1xf32>
    %13 = arith.maximumf %10, %12 : vector<8x1xf32>
    %c0_11 = arith.constant 0 : index
    %c0_12 = arith.constant 0 : index
    %14 = vector.load %arg17[%c0_11, %c0_12] : memref<8x1xf32, #tpu.memory_space<vmem>>, vector<8x1xf32>
    %15 = arith.subf %10, %13 : vector<8x1xf32>
    %16 = math.exp %15 : vector<8x1xf32>
    %17 = arith.mulf %14, %16 : vector<8x1xf32>
    %18 = vector.broadcast %13 : vector<8x1xf32> to vector<8x384xf32>
    %19 = arith.subf %8, %18 : vector<8x384xf32>
    %20 = math.exp %19 : vector<8x384xf32>
    %cst_13 = arith.constant dense<0.000000e+00> : vector<8xf32>
    %21 = vector.multi_reduction <add>, %20, %cst_13 [1] : vector<8x384xf32> to vector<8xf32>
    %22 = vector.shape_cast %21 : vector<8xf32> to vector<8x1xf32>
    %23 = arith.addf %17, %22 : vector<8x1xf32>
    %c0_14 = arith.constant 0 : index
    %c0_15 = arith.constant 0 : index
    %24 = vector.load %arg17[%c0_14, %c0_15] : memref<8x1xf32, #tpu.memory_space<vmem>>, vector<8x1xf32>
    tpu.vector_store %arg17[%c0_14, %c0_15], %23 {strides = array<i32>} : memref<8x1xf32, #tpu.memory_space<vmem>>, vector<8x1xf32>,
    %c0_16 = arith.constant 0 : index
    %c0_17 = arith.constant 0 : index
    %25 = vector.load %arg16[%c0_16, %c0_17] : memref<8x1xf32, #tpu.memory_space<vmem>>, vector<8x1xf32>
    tpu.vector_store %arg16[%c0_16, %c0_17], %13 {strides = array<i32>} : memref<8x1xf32, #tpu.memory_space<vmem>>, vector<8x1xf32>,
    %c0_i32_18 = arith.constant 0 : i32
    %26 = arith.cmpi eq, %arg0, %c0_i32_18 : i32
    %27 = arith.extui %26 : i1 to i32
    %c0_i32_19 = arith.constant 0 : i32
    %28 = arith.cmpi ne, %27, %c0_i32_19 : i32
    scf.if %28 {
      %c0_20 = arith.constant 0 : index
      %c0_21 = arith.constant 0 : index
      %29 = vector.load %arg16[%c0_20, %c0_21] : memref<8x1xf32, #tpu.memory_space<vmem>>, vector<8x1xf32>
      %c0_22 = arith.constant 0 : index
      %c0_23 = arith.constant 0 : index
      %30 = vector.load %arg17[%c0_22, %c0_23] : memref<8x1xf32, #tpu.memory_space<vmem>>, vector<8x1xf32>
      %31 = math.log %30 : vector<8x1xf32>
      %32 = arith.addf %29, %31 : vector<8x1xf32>
      %c0_24 = arith.constant 0 : index
      %c0_25 = arith.constant 0 : index
      %33 = vector.load %arg13[%c0_24, %c0_25] : memref<8x1xf32, #tpu.memory_space<vmem>>, vector<8x1xf32>
      tpu.vector_store %arg13[%c0_24, %c0_25], %32 {strides = array<i32>} : memref<8x1xf32, #tpu.memory_space<vmem>>, vector<8x1xf32>,
    } else {
    }
    return
  }
  func.func @transform_0(%arg0: i32) -> (i32, i32) {
    %c0_i32 = arith.constant 0 : i32
    %c0_i32_0 = arith.constant 0 : i32
    %c0_i32_1 = arith.constant 0 : i32
    return %c0_i32, %c0_i32_0 : i32, i32
  }
  func.func @transform_1(%arg0: i32) -> (i32, i32) {
    %c0_i32 = arith.constant 0 : i32
    %c0_i32_0 = arith.constant 0 : i32
    %c0_i32_1 = arith.constant 0 : i32
    return %c0_i32, %c0_i32_0 : i32, i32
  }
  func.func @transform_2(%arg0: i32) -> (i32, i32, i32) {
    %c0_i32 = arith.constant 0 : i32
    %c0_i32_0 = arith.constant 0 : i32
    %c0_i32_1 = arith.constant 0 : i32
    %c0_i32_2 = arith.constant 0 : i32
    return %c0_i32, %c0_i32_0, %c0_i32_1 : i32, i32, i32
  }
  func.func @transform_3(%arg0: i32) -> (i32, i32) {
    %c0_i32 = arith.constant 0 : i32
    %c0_i32_0 = arith.constant 0 : i32
    %c0_i32_1 = arith.constant 0 : i32
    return %c0_i32, %c0_i32_0 : i32, i32
  }
  func.func @transform_4(%arg0: i32) -> (i32, i32) {
    %c0_i32 = arith.constant 0 : i32
    %c0_i32_0 = arith.constant 0 : i32
    %c0_i32_1 = arith.constant 0 : i32
    return %c0_i32, %c0_i32_0 : i32, i32
  }
  func.func @transform_5(%arg0: i32) -> (i32, i32) {
    %c0_i32 = arith.constant 0 : i32
    %c0_i32_0 = arith.constant 0 : i32
    %c0_i32_1 = arith.constant 0 : i32
    return %c0_i32, %c0_i32_0 : i32, i32
  }
  func.func @transform_6(%arg0: i32) -> (i32, i32) {
    %c0_i32 = arith.constant 0 : i32
    %c0_i32_0 = arith.constant 0 : i32
    %c0_i32_1 = arith.constant 0 : i32
    return %c0_i32, %c0_i32_0 : i32, i32
  }
  func.func @transform_7(%arg0: i32) -> (i32, i32, i32) {
    %c0_i32 = arith.constant 0 : i32
    %c0_i32_0 = arith.constant 0 : i32
    %c0_i32_1 = arith.constant 0 : i32
    %c0_i32_2 = arith.constant 0 : i32
    return %c0_i32, %c0_i32_0, %c0_i32_1 : i32, i32, i32
  }
  func.func @transform_8(%arg0: i32) -> (i32, i32) {
    %c0_i32 = arith.constant 0 : i32
    %c0_i32_0 = arith.constant 0 : i32
    %c0_i32_1 = arith.constant 0 : i32
    return %c0_i32, %c0_i32_0 : i32, i32
  }
  func.func @transform_9(%arg0: i32) -> (i32, i32) {
    %c0_i32 = arith.constant 0 : i32
    %c0_i32_0 = arith.constant 0 : i32
    return %c0_i32, %arg0 : i32, i32
  }
  func.func @transform_10(%arg0: i32) -> (i32, i32) {
    %c0_i32 = arith.constant 0 : i32
    %c0_i32_0 = arith.constant 0 : i32
    return %c0_i32, %arg0 : i32, i32
  }
  func.func @transform_11(%arg0: i32) -> (i32, i32) {
    %c0_i32 = arith.constant 0 : i32
    %c0_i32_0 = arith.constant 0 : i32
    return %c0_i32, %arg0 : i32, i32
  }
  func.func @transform_12(%arg0: i32) -> (i32, i32) {
    %c0_i32 = arith.constant 0 : i32
    %c0_i32_0 = arith.constant 0 : i32
    %c0_i32_1 = arith.constant 0 : i32
    return %c0_i32, %c0_i32_0 : i32, i32
  }
  func.func @transform_13(%arg0: i32) -> (i32, i32) {
    %c0_i32 = arith.constant 0 : i32
    %c0_i32_0 = arith.constant 0 : i32
    %c0_i32_1 = arith.constant 0 : i32
    return %c0_i32, %c0_i32_0 : i32, i32
  }
}

</mosaic_0001>

<bundles_post_ra>
// kernel: tpu_custom_call.1
= control target key start
LH: loop header
LB: loop body
LE: loop exit
PB: predicated region body
PF: predicated region fallthrough
CT: control target
= control target key end

     0   :  { %19 = vsyncpa [#allocation6], 0  ;;  %s2737_s0 = inlined_call_operand.hbm [shape: f32[8,128], index: 0, kind: input, shape index: {}]   ;;  %s2738_s1 = inlined_call_operand.hbm [shape: f32[8,128], index: 1, kind: input, shape index: {}]   ;;  %s2739_s2 = inlined_call_operand.hbm [shape: f32[8,8,128], index: 2, kind: input, shape index: {}]   ;;  %s2740_s3 = inlined_call_operand.hbm [shape: f32[128,384], index: 3, kind: input, shape index: {}]   ;;  %s2741_s4 = inlined_call_operand.hbm [shape: f32[128,384], index: 4, kind: input, shape index: {}]   ;;  %s2742_s5 = inlined_call_operand.vmem [shape: f32[1,384], index: 5, kind: input, shape index: {}]   ;;  %s2743_s6 = inlined_call_operand.vmem [shape: f32[1,384], index: 6, kind: input, shape index: {}]   ;;  %s2744_s7 = inlined_call_operand.hbm [shape: f32[2,128,128], index: 7, kind: input, shape index: {}]   ;;  %s2745_s8 = inlined_call_operand.vmem [shape: f32[1,128], index: 8, kind: input, shape index: {}]   ;;  %s2746_s9 = inlined_call_operand.hbm [shape: f32[128,384], index: 9, kind: input, shape index: {}]   ;;  %s2747_s10 = inlined_call_operand.vmem [shape: f32[1,384], index: 10, kind: input, shape index: {}]   ;;  %s2748_s11 = inlined_call_operand.hbm [shape: f32[8,384], index: 11, kind: output, shape index: {0}]   ;;  %s2749_s12 = inlined_call_operand.vmem [shape: f32[8,1], index: 12, kind: output, shape index: {1}]   ;;  %s2750_s13 = inlined_call_operand.hbm [shape: f32[8,128], index: 13, kind: output, shape index: {2}]  }
   0x1   :  { %20 = vsyncpa [#allocation9], 0 }
   0x2   :  { %21 = vsyncpa [#allocation12], 0 }
   0x3   :  { %22 = vsyncpa [#allocation15], 0 }
   0x4   :  { %23 = vsyncpa [#allocation7], 0 }
   0x5   :  { %24 = vsyncpa [#allocation19], 0  ;;  %s2289_s25 = smov [#allocation8]   ;;  %s2290_s27 = smov [#allocation11]  }
   0x6   :  { %s41_s26 = sshll.u32 %s2289_s25, 4  ;;  %s62_s28 = sshll.u32 %s2290_s27, 4  ;;  %s42_s26 = int_to_ptr.vmem [resolvable:$true] %s41_s26  ;;  %s2378_s28 = int_to_ptr.vmem [resolvable:$true] %s62_s28 }
   0x7   :  { %s2079_s14 = scalar_lea.hbm %s2738_s1, 128 }
   0x8   :  { %p2080_p0 = scmp.ne.s32.totalorder %s2738_s1, %s2079_s14  ;;  %p2083_p1 = scmp.lt.u32.totalorder %s2079_s14, %s2738_s1 }
   0xa   :  { %p2085_p2 = pnand %p2083_p1, %p2080_p0 }
   0xc   :  { %2088 = shalt.err (!%p2085_p2)
}
   0xd   :  { %s2089_s19 = scalar_lea.vmem %s42_s26, 128  ;;  %p2094_p4 = scmp.lt.s32.totalorder %s42_s26, %s42_s26 }
   0xe   :  { %p2090_p3 = scmp.ne.s32.totalorder %s42_s26, %s2089_s19  ;;  %p2095_p5 = scmp.lt.s32.totalorder %s2089_s19, %s2089_s19 }
  0x10   :  { %p2096_p6 = por %p2095_p5, %p2094_p4 }
  0x12   :  { %p2097_p7 = pnand %p2096_p6, %p2090_p3 }
  0x14   :  { %2100 = shalt.err (!%p2097_p7)
}
  0x15   :  { %44 = dma.hbm_to_vmem [thread:$0]  %s2738_s1, 128, %s42_s26, [#allocation9]  }
  0x16   :  { %s2101_s24 = scalar_lea.hbm %s2740_s3, 6144 }
  0x17   :  { %p2102_p8 = scmp.ne.s32.totalorder %s2740_s3, %s2101_s24  ;;  %p2105_p9 = scmp.lt.u32.totalorder %s2101_s24, %s2740_s3 }
  0x19   :  { %p2107_p10 = pnand %p2105_p9, %p2102_p8 }
  0x1b   :  { %2110 = shalt.err (!%p2107_p10)
}
  0x1c   :  { %s2111_s14 = scalar_lea.vmem %s2378_s28, 6144  ;;  %p2116_p12 = scmp.lt.s32.totalorder %s2378_s28, %s2378_s28 }
  0x1d   :  { %p2112_p11 = scmp.ne.s32.totalorder %s2378_s28, %s2111_s14  ;;  %p2117_p13 = scmp.lt.s32.totalorder %s2111_s14, %s2111_s14 }
  0x1f   :  { %p2118_p0 = por %p2117_p13, %p2116_p12 }
  0x21   :  { %p2119_p1 = pnand %p2118_p0, %p2112_p11 }
  0x23   :  { %2122 = shalt.err (!%p2119_p1)
}
  0x24   :  { %s2291_s1 = smov 384   ;;  %s2292_s26 = smov 24  }
  0x25   :  { %68 = dma.hbm_to_vmem [thread:$0]  %s2740_s3, 6144, %s2378_s28, [#allocation12], %s2291_s1, %s2291_s1, %s2292_s26  }
  0x26   :  { %s2293_s17 = smov [#allocation14]   ;;  %s2294_s19 = smov [#allocation5]  }
  0x27   :  { %s90_s18 = sshll.u32 %s2293_s17, 4  ;;  %s31_s20 = sshll.u32 %s2294_s19, 4  ;;  %s91_s18 = int_to_ptr.vmem [resolvable:$true] %s90_s18  ;;  %s32_s20 = int_to_ptr.vmem [resolvable:$true] %s31_s20 }
  0x28   :  { %s2123_s23 = scalar_lea.hbm %s2744_s7, 4096 }
  0x29   :  { %p2124_p2 = scmp.ne.s32.totalorder %s2744_s7, %s2123_s23  ;;  %p2127_p3 = scmp.lt.u32.totalorder %s2123_s23, %s2744_s7 }
  0x2b   :  { %p2129_p4 = pnand %p2127_p3, %p2124_p2 }
  0x2d   :  { %2132 = shalt.err (!%p2129_p4)
}
  0x2e   :  { %s2133_s3 = scalar_lea.vmem %s91_s18, 4096  ;;  %p2138_p6 = scmp.lt.s32.totalorder %s91_s18, %s91_s18 }
  0x2f   :  { %p2134_p5 = scmp.ne.s32.totalorder %s91_s18, %s2133_s3  ;;  %p2139_p7 = scmp.lt.s32.totalorder %s2133_s3, %s2133_s3 }
  0x31   :  { %p2140_p8 = por %p2139_p7, %p2138_p6 }
  0x33   :  { %p2141_p9 = pnand %p2140_p8, %p2134_p5 }
  0x35   :  { %2144 = shalt.err (!%p2141_p9)
}
  0x36   :  { %s2295_s28 = smov 128   ;;  %s2296_s30 = smov 8  }
  0x37   :  { %96 = dma.hbm_to_vmem [thread:$0]  %s2744_s7, 4096, %s91_s18, [#allocation15], %s2295_s28, %s2295_s28, %s2296_s30  }
  0x38   :  { %s2145_s19 = scalar_lea.hbm %s2737_s0, 128 }
  0x39   :  { %p2146_p10 = scmp.ne.s32.totalorder %s2737_s0, %s2145_s19  ;;  %p2149_p11 = scmp.lt.u32.totalorder %s2145_s19, %s2737_s0 }
  0x3b   :  { %p2151_p12 = pnand %p2149_p11, %p2146_p10 }
  0x3d   :  { %2154 = shalt.err (!%p2151_p12)
}
  0x3e   :  { %s2155_s25 = scalar_lea.vmem %s32_s20, 128  ;;  %p2160_p0 = scmp.lt.s32.totalorder %s32_s20, %s32_s20 }
  0x3f   :  { %p2156_p13 = scmp.ne.s32.totalorder %s32_s20, %s2155_s25  ;;  %p2161_p1 = scmp.lt.s32.totalorder %s2155_s25, %s2155_s25 }
  0x41   :  { %p2162_p2 = por %p2161_p1, %p2160_p0 }
  0x43   :  { %p2163_p3 = pnand %p2162_p2, %p2156_p13 }
  0x45   :  { %2166 = shalt.err (!%p2163_p3)
}
  0x46   :  { %34 = dma.hbm_to_vmem [thread:$0]  %s2737_s0, 128, %s32_s20, [#allocation6]  }
  0x47   :  { %s2297_s27 = smov [#allocation10]   ;;  %s2298_s3 = smov [#allocation13]  }
  0x48   :  { %s50_s29 = sshll.u32 %s2297_s27, 4  ;;  %s74_s14 = sshll.u32 %s2298_s3, 4  ;;  %s51_s29 = int_to_ptr.vmem [resolvable:$true] %s50_s29  ;;  %s2439_s14 = int_to_ptr.vmem [resolvable:$true] %s74_s14 }
  0x49   :  { %s2167_s17 = scalar_lea.hbm %s2739_s2, 1024 }
  0x4a   :  { %p2168_p4 = scmp.ne.s32.totalorder %s2739_s2, %s2167_s17  ;;  %p2171_p5 = scmp.lt.u32.totalorder %s2167_s17, %s2739_s2 }
  0x4c   :  { %p2173_p6 = pnand %p2171_p5, %p2168_p4 }
  0x4e   :  { %2176 = shalt.err (!%p2173_p6)
}
  0x4f   :  { %s2177_s0 = scalar_lea.vmem %s51_s29, 1024  ;;  %p2182_p8 = scmp.lt.s32.totalorder %s51_s29, %s51_s29 }
  0x50   :  { %p2178_p7 = scmp.ne.s32.totalorder %s51_s29, %s2177_s0  ;;  %p2183_p9 = scmp.lt.s32.totalorder %s2177_s0, %s2177_s0 }
  0x52   :  { %p2184_p10 = por %p2183_p9, %p2182_p8 }
  0x54   :  { %p2185_p11 = pnand %p2184_p10, %p2178_p7 }
  0x56   :  { %2188 = shalt.err (!%p2185_p11)
}
  0x57   :  { %56 = dma.hbm_to_vmem [thread:$0]  %s2739_s2, 1024, %s51_s29, [#allocation9], %s2295_s28, %s2295_s28, %s2296_s30  }
  0x58   :  { %s2189_s18 = scalar_lea.hbm %s2741_s4, 6144 }
  0x59   :  { %p2190_p12 = scmp.ne.s32.totalorder %s2741_s4, %s2189_s18  ;;  %p2193_p13 = scmp.lt.u32.totalorder %s2189_s18, %s2741_s4 }
  0x5b   :  { %p2195_p0 = pnand %p2193_p13, %p2190_p12 }
  0x5d   :  { %2198 = shalt.err (!%p2195_p0)
}
  0x5e   :  { %s2199_s17 = scalar_lea.vmem %s2439_s14, 6144  ;;  %p2204_p2 = scmp.lt.s32.totalorder %s2439_s14, %s2439_s14 }
  0x5f   :  { %p2200_p1 = scmp.ne.s32.totalorder %s2439_s14, %s2199_s17  ;;  %p2205_p3 = scmp.lt.s32.totalorder %s2199_s17, %s2199_s17 }
  0x61   :  { %p2206_p4 = por %p2205_p3, %p2204_p2 }
  0x63   :  { %p2207_p5 = pnand %p2206_p4, %p2200_p1 }
  0x65   :  { %2210 = shalt.err (!%p2207_p5)
}
  0x66   :  { %80 = dma.hbm_to_vmem [thread:$0]  %s2741_s4, 6144, %s2439_s14, [#allocation12], %s2291_s1, %s2291_s1, %s2292_s26  }
  0x67   :  { %s2299_s30 = smov [#allocation16]   ;;  %s2211_s22 = scalar_lea.hbm %s2746_s9, 6144 }
  0x68   :  { %s104_s29 = sshll.u32 %s2299_s30, 4  ;;  %p2212_p6 = scmp.ne.s32.totalorder %s2746_s9, %s2211_s22  ;;  %s105_s29 = int_to_ptr.vmem [resolvable:$true] %s104_s29 }
  0x69   :  { %p2215_p7 = scmp.lt.u32.totalorder %s2211_s22, %s2746_s9 }
  0x6b   :  { %p2217_p8 = pnand %p2215_p7, %p2212_p6 }
  0x6d   :  { %2220 = shalt.err (!%p2217_p8)
}
  0x6e   :  { %s2221_s25 = scalar_lea.vmem %s105_s29, 6144  ;;  %p2226_p10 = scmp.lt.s32.totalorder %s105_s29, %s105_s29 }
  0x6f   :  { %p2222_p9 = scmp.ne.s32.totalorder %s105_s29, %s2221_s25  ;;  %p2227_p11 = scmp.lt.s32.totalorder %s2221_s25, %s2221_s25 }
  0x71   :  { %p2228_p12 = por %p2227_p11, %p2226_p10 }
  0x73   :  { %p2229_p13 = pnand %p2228_p12, %p2222_p9 }
  0x75   :  { %2232 = shalt.err (!%p2229_p13)
}
  0x76   :  { %110 = dma.hbm_to_vmem [thread:$0]  %s2746_s9, 6144, %s105_s29, [#allocation15], %s2291_s1, %s2291_s1, %s2292_s26  }
  0x77   :  { %2277 = dma.done.wait [#allocation6], 128  }
  0x78   :  { %2278 = vsyncadd [#allocation6], 4294967168 }
  0x79   :  { %2279 = dma.done.wait [#allocation9], 1152  }
  0x7a   :  { %2280 = vsyncadd [#allocation9], 4294966144 }
  0x7b   :  { %2281 = dma.done.wait [#allocation12], 12288  }
  0x7c   :  { %2282 = vsyncadd [#allocation12], 4294955008 }
  0x7d   :  { %2283 = dma.done.wait [#allocation15], 10240  }
  0x7e   :  { %2284 = vsyncadd [#allocation15], 4294957056  ;;  %v2300_v0 = vmov 0.0|0.0   ;;  %v2301_v1 = vmov 0.0   ;;  %vm2302_vm0 = vmmov 0   ;;  %v141_v2 = vld [vmem:[#allocation11 + $0x8] sm:$0xff] }
  0x7f   :  { %1828 = vmatprep.subr.bf16.mxu1 %v2300_v0  ;;  %269 = vmatprep.mubr.f32.mxu0 %v2301_v1  ;;  %v144_v3 = vld [vmem:[#allocation11 + $0x20] sm:$0xff]  ;;  %v143_v6 = vld [vmem:[#allocation11 + $0x18] sm:$0xff]  ;;  %v150_v8 = vld [vmem:[#allocation11 + $0x50] sm:$0xff]  ;;  %vm738_vm1 = vcmask 1041409   ;;  %vm740_vm2 = vcmask 1042434   ;;  %vm742_vm3 = vcmask 1043459  }
  0x80   :  { %1653 = vmatprep.mubr.msk.f32.mxu1 %vm2302_vm0, %v2301_v1  ;;  %v140_v4 = vld [vmem:[#allocation11] sm:$0xff]  ;;  %v1796_v5 = vpack.c.bf16 %v144_v3, %v141_v2  ;;  %v147_v7 = vld [vmem:[#allocation11 + $0x38] sm:$0xff]  ;;  %v146_v11 = vld [vmem:[#allocation11 + $0x30] sm:$0xff]  ;;  %vm744_vm4 = vcmask 1044484   ;;  %vm746_vm5 = vcmask 1045509   ;;  %vm748_vm6 = vcmask 1046534  }
  0x81   :  { %v1798_v9 = vpack.c.bf16 %v143_v6, %v140_v4  ;;  %v1800_v10 = vpack.c.bf16 %v150_v8, %v147_v7  ;;  %v149_v12 = vld [vmem:[#allocation11 + $0x48] sm:$0xff]  ;;  %v156_v14 = vld [vmem:[#allocation11 + $0x80] sm:$0xff]  ;;  %v155_v18 = vld [vmem:[#allocation11 + $0x78] sm:$0xff]  ;;  %vm750_vm7 = vcmask 1047559   ;;  %vm753_vm8 = vcmask 64512   ;;  %s2307_s3 = smov [#allocation18]  }
  0x82   :  { %v153_v13 = vld [vmem:[#allocation11 + $0x68] sm:$0xff]  ;;  %1797 = vmatprep.subr.bf16.mxu0 %v1796_v5  ;;  %v1802_v15 = vpack.c.bf16 %v149_v12, %v146_v11  ;;  %v152_v17 = vld [vmem:[#allocation11 + $0x60] sm:$0xff]  ;;  %v159_v19 = vld [vmem:[#allocation11 + $0x98] sm:$0xff]  ;;  %vm1242_vm9 = vcmask 7168   ;;  %s1515_s15 = sshll.u32 %s2307_s3, 4  ;;  %s1516_s15 = int_to_ptr.vmem [resolvable:$true] %s1515_s15 }
  0x83   :  { %1799 = vmatpush1.bf16.msra.mxu0 %v1798_v9  ;;  %v1804_v16 = vpack.c.bf16 %v156_v14, %v153_v13  ;;  %v162_v20 = vld [vmem:[#allocation11 + $0xb0] sm:$0xff]  ;;  %v1806_v21 = vpack.c.bf16 %v155_v18, %v152_v17  ;;  %v161_v24 = vld [vmem:[#allocation11 + $0xa8] sm:$0xff]  ;;  %v168_v28 = vld [vmem:[#allocation11 + $0xe0] sm:$0xff]  ;;  %1244 = vst.msk [vmem:[#allocation4] sm:$0xff] %vm1242_vm9, %v2301_v1 }
  0x84   :  { %1801 = vmatprep.subr.bf16.mxu0 %v1800_v10  ;;  %v158_v22 = vld [vmem:[#allocation11 + $0x90] sm:$0xff]  ;;  %v1808_v23 = vpack.c.bf16 %v162_v20, %v159_v19  ;;  %v145_v26 = vld [vmem:[#allocation11 + $0x28] sm:$0xff]  ;;  %v148_v30 = vld [vmem:[#allocation11 + $0x40] sm:$0xff] }
  0x85   :  { %v142_v25 = vld [vmem:[#allocation11 + $0x10] sm:$0xff]  ;;  %v165_v27 = vld [vmem:[#allocation11 + $0xc8] sm:$0xff]  ;;  %v151_v31 = vld [vmem:[#allocation11 + $0x58] sm:$0xff]  ;;  %v1810_v32 = vpack.c.bf16 %v161_v24, %v158_v22 }
  0x86   :  { %v1829_v29 = vpack.c.bf16 %v145_v26, %v142_v25  ;;  %v1832_v33 = vpack.c.bf16 %v151_v31, %v148_v30  ;;  %v1812_v34 = vpack.c.bf16 %v168_v28, %v165_v27  ;;  %v164_v35 = vld [vmem:[#allocation11 + $0xc0] sm:$0xff]  ;;  %v167_v36 = vld [vmem:[#allocation11 + $0xd8] sm:$0xff]  ;;  %v154_v37 = vld [vmem:[#allocation11 + $0x70] sm:$0xff] }
  0x87   :  { %1803 = vmatpush1.bf16.msra.mxu0 %v1802_v15  ;;  %v171_v38 = vld [vmem:[#allocation11 + $0xf8] sm:$0xff]  ;;  %v174_v39 = vld [vmem:[#allocation11 + $0x110] sm:$0xff]  ;;  %v157_v40 = vld [vmem:[#allocation11 + $0x88] sm:$0xff]  ;;  %v1814_v41 = vpack.c.bf16 %v167_v36, %v164_v35 }
  0x88   :  { %1805 = vmatprep.subr.bf16.mxu0 %v1804_v16  ;;  %1830 = vmatpush3.bf16.msra.mxu1 %v1829_v29  ;;  %v170_v42 = vld [vmem:[#allocation11 + $0xf0] sm:$0xff]  ;;  %v1835_v43 = vpack.c.bf16 %v157_v40, %v154_v37  ;;  %v1816_v44 = vpack.c.bf16 %v174_v39, %v171_v38  ;;  %v173_v45 = vld [vmem:[#allocation11 + $0x108] sm:$0xff]  ;;  %v160_v46 = vld [vmem:[#allocation11 + $0xa0] sm:$0xff] }
  0x89   :  { %1831 = vmatprep.subr.bf16.mxu1 %v2300_v0  ;;  %v163_v47 = vld [vmem:[#allocation11 + $0xb8] sm:$0xff]  ;;  %v177_v48 = vld [vmem:[#allocation11 + $0x128] sm:$0xff]  ;;  %v180_v49 = vld [vmem:[#allocation11 + $0x140] sm:$0xff]  ;;  %v1818_v50 = vpack.c.bf16 %v173_v45, %v170_v42 }
  0x8a   :  { %v176_v51 = vld [vmem:[#allocation11 + $0x120] sm:$0xff]  ;;  %v1838_v52 = vpack.c.bf16 %v163_v47, %v160_v46  ;;  %v1820_v53 = vpack.c.bf16 %v180_v49, %v177_v48  ;;  %v179_v54 = vld [vmem:[#allocation11 + $0x138] sm:$0xff]  ;;  %v166_v55 = vld [vmem:[#allocation11 + $0xd0] sm:$0xff] }
  0x8b   :  { %1807 = vmatpush1.bf16.msra.mxu0 %v1806_v21  ;;  %v169_v56 = vld [vmem:[#allocation11 + $0xe8] sm:$0xff]  ;;  %v183_v57 = vld [vmem:[#allocation11 + $0x158] sm:$0xff]  ;;  %v186_v58 = vld [vmem:[#allocation11 + $0x170] sm:$0xff]  ;;  %v1822_v59 = vpack.c.bf16 %v179_v54, %v176_v51 }
  0x8c   :  { %1809 = vmatprep.subr.bf16.mxu0 %v1808_v23  ;;  %1833 = vmatpush3.bf16.msra.mxu1 %v1832_v33  ;;  %v182_v60 = vld [vmem:[#allocation11 + $0x150] sm:$0xff]  ;;  %v1841_v61 = vpack.c.bf16 %v169_v56, %v166_v55  ;;  %v1824_v62 = vpack.c.bf16 %v186_v58, %v183_v57  ;;  %v185_v63 = vld [vmem:[#allocation11 + $0x168] sm:$0xff]  ;;  %v172_v2 = vld [vmem:[#allocation11 + $0x100] sm:$0xff] }
  0x8d   :  { %1834 = vmatprep.subr.bf16.mxu1 %v2300_v0  ;;  %v175_v3 = vld [vmem:[#allocation11 + $0x118] sm:$0xff]  ;;  %v347_v4 = vld [vmem:[#allocation13 + $0x8] sm:$0xff]  ;;  %v350_v5 = vld [vmem:[#allocation13 + $0x20] sm:$0xff]  ;;  %v1826_v6 = vpack.c.bf16 %v185_v63, %v182_v60 }
  0x8e   :  { %v346_v7 = vld [vmem:[#allocation13] sm:$0xff]  ;;  %v1844_v8 = vpack.c.bf16 %v175_v3, %v172_v2  ;;  %v1852_v9 = vpack.c.bf16 %v350_v5, %v347_v4  ;;  %v349_v10 = vld [vmem:[#allocation13 + $0x18] sm:$0xff]  ;;  %v178_v11 = vld [vmem:[#allocation11 + $0x130] sm:$0xff] }
  0x8f   :  { %1811 = vmatpush1.bf16.msra.mxu0 %v1810_v32  ;;  %v181_v12 = vld [vmem:[#allocation11 + $0x148] sm:$0xff]  ;;  %v353_v13 = vld [vmem:[#allocation13 + $0x38] sm:$0xff]  ;;  %v356_v14 = vld [vmem:[#allocation13 + $0x50] sm:$0xff]  ;;  %v1854_v16 = vpack.c.bf16 %v349_v10, %v346_v7 }
  0x90   :  { %1813 = vmatprep.subr.bf16.mxu0 %v1812_v34  ;;  %1836 = vmatpush3.bf16.msra.mxu1 %v1835_v43  ;;  %v139_v15 = vld [vmem:[#allocation5] sm:$0xff]  ;;  %v1847_v18 = vpack.c.bf16 %v181_v12, %v178_v11  ;;  %v1856_v19 = vpack.c.bf16 %v356_v14, %v353_v13  ;;  %v355_v20 = vld [vmem:[#allocation13 + $0x48] sm:$0xff]  ;;  %v184_v21 = vld [vmem:[#allocation11 + $0x160] sm:$0xff] }
  0x91   :  { %1837 = vmatprep.subr.bf16.mxu1 %v2300_v0  ;;  %v352_v17 = vld [vmem:[#allocation13 + $0x30] sm:$0xff]  ;;  %v187_v22 = vld [vmem:[#allocation11 + $0x178] sm:$0xff]  ;;  %v359_v23 = vld [vmem:[#allocation13 + $0x68] sm:$0xff] }
  0x92   :  { %v362_v24 = vld [vmem:[#allocation13 + $0x80] sm:$0xff]  ;;  %v1858_v25 = vpack.c.bf16 %v355_v20, %v352_v17  ;;  %v1850_v27 = vpack.c.bf16 %v187_v22, %v184_v21  ;;  %v361_v29 = vld [vmem:[#allocation13 + $0x78] sm:$0xff]  ;;  %v348_v30 = vld [vmem:[#allocation13 + $0x10] sm:$0xff] }
  0x93   :  { %1815 = vmatpush1.bf16.msra.mxu0 %v1814_v41  ;;  %v358_v26 = vld [vmem:[#allocation13 + $0x60] sm:$0xff]  ;;  %v1860_v28 = vpack.c.bf16 %v362_v24, %v359_v23  ;;  %v351_v31 = vld [vmem:[#allocation13 + $0x28] sm:$0xff]  ;;  %v365_v32 = vld [vmem:[#allocation13 + $0x98] sm:$0xff] }
  0x94   :  { %1817 = vmatprep.subr.bf16.mxu0 %v1816_v44  ;;  %1839 = vmatpush3.bf16.msra.mxu1 %v1838_v52  ;;  %v368_v33 = vld [vmem:[#allocation13 + $0xb0] sm:$0xff]  ;;  %v1862_v34 = vpack.c.bf16 %v361_v29, %v358_v26  ;;  %v1885_v36 = vpack.c.bf16 %v351_v31, %v348_v30  ;;  %v367_v38 = vld [vmem:[#allocation13 + $0xa8] sm:$0xff]  ;;  %v354_v39 = vld [vmem:[#allocation13 + $0x40] sm:$0xff] }
  0x95   :  { %1840 = vmatprep.subr.bf16.mxu1 %v2300_v0  ;;  %v364_v35 = vld [vmem:[#allocation13 + $0x90] sm:$0xff]  ;;  %v1864_v37 = vpack.c.bf16 %v368_v33, %v365_v32  ;;  %v357_v40 = vld [vmem:[#allocation13 + $0x58] sm:$0xff]  ;;  %v371_v41 = vld [vmem:[#allocation13 + $0xc8] sm:$0xff] }
  0x96   :  { %v374_v42 = vld [vmem:[#allocation13 + $0xe0] sm:$0xff]  ;;  %v1866_v43 = vpack.c.bf16 %v367_v38, %v364_v35  ;;  %v1888_v45 = vpack.c.bf16 %v357_v40, %v354_v39  ;;  %v373_v47 = vld [vmem:[#allocation13 + $0xd8] sm:$0xff]  ;;  %v360_v48 = vld [vmem:[#allocation13 + $0x70] sm:$0xff] }
  0x97   :  { %1819 = vmatpush1.bf16.msra.mxu0 %v1818_v50  ;;  %v370_v44 = vld [vmem:[#allocation13 + $0xc0] sm:$0xff]  ;;  %v1868_v46 = vpack.c.bf16 %v374_v42, %v371_v41  ;;  %v363_v49 = vld [vmem:[#allocation13 + $0x88] sm:$0xff]  ;;  %v377_v50 = vld [vmem:[#allocation13 + $0xf8] sm:$0xff] }
  0x98   :  { %1821 = vmatprep.subr.bf16.mxu0 %v1820_v53  ;;  %1842 = vmatpush3.bf16.msra.mxu1 %v1841_v61  ;;  %v380_v51 = vld [vmem:[#allocation13 + $0x110] sm:$0xff]  ;;  %v1870_v52 = vpack.c.bf16 %v373_v47, %v370_v44  ;;  %v1891_v54 = vpack.c.bf16 %v363_v49, %v360_v48  ;;  %v379_v56 = vld [vmem:[#allocation13 + $0x108] sm:$0xff]  ;;  %v366_v57 = vld [vmem:[#allocation13 + $0xa0] sm:$0xff] }
  0x99   :  { %1843 = vmatprep.subr.bf16.mxu1 %v2300_v0  ;;  %v376_v53 = vld [vmem:[#allocation13 + $0xf0] sm:$0xff]  ;;  %v1872_v55 = vpack.c.bf16 %v380_v51, %v377_v50  ;;  %v369_v58 = vld [vmem:[#allocation13 + $0xb8] sm:$0xff]  ;;  %v386_v60 = vld [vmem:[#allocation13 + $0x140] sm:$0xff]  ;;  %v190_v50 = vlaneseq }
  0x9a   :  { %v1874_v61 = vpack.c.bf16 %v379_v56, %v376_v53  ;;  %v1894_v63 = vpack.c.bf16 %v369_v58, %v366_v57  ;;  %v385_v3 = vld [vmem:[#allocation13 + $0x138] sm:$0xff]  ;;  %v372_v4 = vld [vmem:[#allocation13 + $0xd0] sm:$0xff]  ;;  %v375_v5 = vld [vmem:[#allocation13 + $0xe8] sm:$0xff] }
  0x9b   :  { %1823 = vmatpush1.bf16.msra.mxu0 %v1822_v59  ;;  %v383_v59 = vld [vmem:[#allocation13 + $0x128] sm:$0xff]  ;;  %v392_v7 = vld [vmem:[#allocation13 + $0x170] sm:$0xff]  ;;  %v1897_v10 = vpack.c.bf16 %v375_v5, %v372_v4  ;;  %v378_v13 = vld [vmem:[#allocation13 + $0x100] sm:$0xff]  ;;  %v2532_v51 = vshrl.u32 %v190_v50, 7 }
  0x9c   :  { %1825 = vmatprep.subr.bf16.mxu0 %v1824_v62  ;;  %1845 = vmatpush3.bf16.msra.mxu1 %v1844_v8  ;;  %v382_v62 = vld [vmem:[#allocation13 + $0x120] sm:$0xff]  ;;  %v1876_v2 = vpack.c.bf16 %v386_v60, %v383_v59  ;;  %v391_v12 = vld [vmem:[#allocation13 + $0x168] sm:$0xff]  ;;  %v381_v14 = vld [vmem:[#allocation13 + $0x118] sm:$0xff] }
  0x9d   :  { %1846 = vmatprep.subr.bf16.mxu1 %v2300_v0  ;;  %v1878_v8 = vpack.c.bf16 %v385_v3, %v382_v62  ;;  %v384_v17 = vld [vmem:[#allocation13 + $0x130] sm:$0xff]  ;;  %v390_v21 = vld [vmem:[#allocation13 + $0x160] sm:$0xff]  ;;  %v393_v22 = vld [vmem:[#allocation13 + $0x178] sm:$0xff] }
  0x9e   :  { %v1906_v23 = vpack.c.bf16 %v393_v22, %v390_v21  ;;  %v1043_v24 = vld [vmem:[#allocation14] sm:$0xff]  ;;  %v1048_v31 = vld [vmem:[#allocation14 + $0x28] sm:$0xff]  ;;  %v1049_v33 = vld [vmem:[#allocation14 + $0x30] sm:$0xff]  ;;  %v2303_v21 = vmov 1966171168  }
  0x9f   :  { %1827 = vmatpush1.bf16.msra.mxu0 %v1826_v6  ;;  %v389_v6 = vld [vmem:[#allocation13 + $0x158] sm:$0xff]  ;;  %v1047_v30 = vld [vmem:[#allocation14 + $0x20] sm:$0xff]  ;;  %v1053_v39 = vld [vmem:[#allocation14 + $0x50] sm:$0xff]  ;;  %v585_v22 = vunpack.c.l.s4 %v2303_v21 }
  0xa0   :  { %1853 = vmatprep.subr.bf16.mxu0 %v1852_v9  ;;  %1848 = vmatpush3.bf16.msra.mxu1 %v1847_v18  ;;  %v388_v9 = vld [vmem:[#allocation13 + $0x150] sm:$0xff]  ;;  %v1880_v11 = vpack.c.bf16 %v392_v7, %v389_v6  ;;  %v387_v18 = vld [vmem:[#allocation13 + $0x148] sm:$0xff]  ;;  %v1939_v32 = vpack.c.bf16 %v1048_v31, %v1047_v30  ;;  %v1054_v40 = vld [vmem:[#allocation14 + $0x58] sm:$0xff] }
  0xa1   :  { %1849 = vmatprep.subr.bf16.mxu1 %v2300_v0  ;;  %v1903_v20 = vpack.c.bf16 %v387_v18, %v384_v17  ;;  %v1948_v41 = vpack.c.bf16 %v1054_v40, %v1053_v39  ;;  %v1055_v42 = vld [vmem:[#allocation14 + $0x60] sm:$0xff] }
  0xa2   :  { %270 = vmatmul.mubr.f32.vlgmr.msra.gmra.mrb[0].mxu0 %v139_v15  ;;  %v394_v53 = vld [vmem:[%s2743_s6] sm:$0x7] }
  0xa3   :  { %1855 = vmatpush1.bf16.msra.mxu0 %v1854_v16  ;;  %475 = vmatprep.mubr.f32.mxu0 %v2301_v1  ;;  %v1900_v16 = vpack.c.bf16 %v381_v14, %v378_v13 }
  0xa4   :  { %1857 = vmatprep.subr.bf16.mxu0 %v1856_v19  ;;  %1851 = vmatpush3.bf16.msra.mxu1 %v1850_v27  ;;  %v2511_v19 = vld [vmem:[#allocation8] sm:$0xff]  ;;  %v1045_v27 = vld [vmem:[#allocation14 + $0x10] sm:$0xff] }
  0xa5   :  { %1884 = vmatprep.subr.bf16.mxu1 %v2300_v0 }
  0xa7   :  { %1859 = vmatpush1.bf16.msra.mxu0 %v1858_v25  ;;  %1654 = vmatmul.mubr.f32.vlgmr.msra.gmra.mrb[0].mxu1 %v139_v15  ;;  %v1882_v15 = vpack.c.bf16 %v391_v12, %v388_v9  ;;  %v1044_v25 = vld [vmem:[#allocation14 + $0x8] sm:$0xff] }
  0xa8   :  { %1861 = vmatprep.subr.bf16.mxu0 %v1860_v28  ;;  %1886 = vmatpush3.bf16.msra.mxu1 %v1885_v36  ;;  %v1933_v26 = vpack.c.bf16 %v1044_v25, %v1043_v24  ;;  %v1046_v28 = vld [vmem:[#allocation14 + $0x18] sm:$0xff]  ;;  %v1051_v36 = vld [vmem:[#allocation14 + $0x40] sm:$0xff]  ;;  %v586_v24 = vunpack.c.0.s8 %v585_v22 }
  0xa9   :  { %1887 = vmatprep.subr.bf16.mxu1 %v2300_v0  ;;  %1688 = vmatprep.mubr.msk.f32.mxu1 %vm2302_vm0, %v2301_v1  ;;  %v1936_v29 = vpack.c.bf16 %v1046_v28, %v1045_v27 }
  0xab   :  { %1863 = vmatpush1.bf16.msra.mxu0 %v1862_v34  ;;  %v1050_v34 = vld [vmem:[#allocation14 + $0x38] sm:$0xff] }
  0xac   :  { %1865 = vmatprep.subr.bf16.mxu0 %v1864_v37  ;;  %1889 = vmatpush3.bf16.msra.mxu1 %v1888_v45  ;;  %v1942_v35 = vpack.c.bf16 %v1050_v34, %v1049_v33  ;;  %v1052_v37 = vld [vmem:[#allocation14 + $0x48] sm:$0xff]  ;;  %v1057_v45 = vld [vmem:[#allocation14 + $0x70] sm:$0xff] }
  0xad   :  { %1890 = vmatprep.subr.bf16.mxu1 %v2300_v0  ;;  %v1945_v38 = vpack.c.bf16 %v1052_v37, %v1051_v36  ;;  %v2559_v36 = vld [vmem:[#allocation10] sm:$0xff] }
  0xaf   :  { %1867 = vmatpush1.bf16.msra.mxu0 %v1866_v43  ;;  %v1056_v43 = vld [vmem:[#allocation14 + $0x68] sm:$0xff] }
  0xb0   :  { %1869 = vmatprep.subr.bf16.mxu0 %v1868_v46  ;;  %1892 = vmatpush3.bf16.msra.mxu1 %v1891_v54  ;;  %v1951_v44 = vpack.c.bf16 %v1056_v43, %v1055_v42  ;;  %v1058_v46 = vld [vmem:[#allocation14 + $0x78] sm:$0xff]  ;;  %v188_v54 = vld [vmem:[%s2742_s5] sm:$0x7] }
  0xb1   :  { %1893 = vmatprep.subr.bf16.mxu1 %v2300_v0  ;;  %v1954_v47 = vpack.c.bf16 %v1058_v46, %v1057_v45  ;;  %v2567_v46 = vld [vmem:[#allocation10 + $0x8] sm:$0xff] }
  0xb3   :  { %1871 = vmatpush1.bf16.msra.mxu0 %v1870_v52  ;;  %v2535_v52 = vsub.s32 0, %v2532_v51 }
  0xb4   :  { %1873 = vmatprep.subr.bf16.mxu0 %v1872_v55  ;;  %1895 = vmatpush3.bf16.msra.mxu1 %v1894_v63  ;;  %v2544_v55 = vsub.s32 1, %v2532_v51 }
  0xb5   :  { %1896 = vmatprep.subr.bf16.mxu1 %v2300_v0  ;;  %v193_v56 = vrot.slane %v188_v54, %v2535_v52  ;;  %v399_v57 = vrot.slane %v394_v53, %v2535_v52 }
  0xb6   :  { %v197_v58 = vrot.slane %v188_v54, %v2544_v55  ;;  %v403_v59 = vrot.slane %v394_v53, %v2544_v55 }
  0xb7   :  { %1875 = vmatpush1.bf16.msra.mxu0 %v1874_v61  ;;  %v2012_v60 = vadd.f32 %v399_v57, %v193_v56 }
  0xb8   :  { %1877 = vmatprep.subr.bf16.mxu0 %v1876_v2  ;;  %1898 = vmatpush3.bf16.msra.mxu1 %v1897_v10  ;;  %v2014_v62 = vadd.f32 %v403_v59, %v197_v58  ;;  %v2551_v10 = vsub.s32 2, %v2532_v51  ;;  %v2575_v58 = vld [vmem:[#allocation10 + $0x20] sm:$0xff] }
  0xb9   :  { %1899 = vmatprep.subr.bf16.mxu1 %v2300_v0 }
  0xba   :  { %v201_v13 = vrot.slane %v188_v54, %v2551_v10 }
  0xbb   :  { %1879 = vmatpush1.bf16.msra.mxu0 %v1878_v8 }
  0xbc   :  { %1881 = vmatprep.subr.bf16.mxu0 %v1880_v11  ;;  %1901 = vmatpush3.bf16.msra.mxu1 %v1900_v16  ;;  %v407_v11 = vrot.slane %v394_v53, %v2551_v10  ;;  %v2571_v53 = vld [vmem:[#allocation10 + $0x18] sm:$0xff] }
  0xbd   :  { %1902 = vmatprep.subr.bf16.mxu1 %v2300_v0 }
  0xbf   :  { %1883 = vmatpush1.bf16.msra.mxu0 %v1882_v15 }
  0xc0   :  { %1908 = vmatprep.subr.bf16.mxu0 %v2300_v0  ;;  %1904 = vmatpush3.bf16.msra.mxu1 %v1903_v20 }
  0xc1   :  { %1905 = vmatprep.subr.bf16.mxu1 %v2300_v0 }
  0xc2   :  { %476 = vmatmul.mubr.f32.vlgmr.msra.gmra.mrb[0].mxu0 %v2511_v19 }
  0xc3   :  { %1723 = vmatprep.mubr.msk.f32.mxu0 %vm2302_vm0, %v2301_v1 }
  0xc4   :  { %1907 = vmatpush3.bf16.msra.mxu1 %v1906_v23 }
  0xc5   :  { %1932 = vmatprep.subr.bf16.mxu1 %v2300_v0 }
  0xc7   :  { %1689 = vmatmul.mubr.f32.vlgmr.msra.gmra.mrb[2].mxu1 %v2511_v19 }
  0xc8   :  { %1758 = vmatprep.mubr.msk.f32.mxu1 %vm2302_vm0, %v2301_v1  ;;  %1934 = vmatpush3.bf16.msra.mxu1 %v1933_v26 }
  0xc9   :  { %1935 = vmatprep.subr.bf16.mxu1 %v2300_v0 }
  0xcc   :  { %1937 = vmatpush3.bf16.msra.mxu1 %v1936_v29  ;;  %v589_v29 = vsub.s32 %v586_v24, %v2532_v51 }
  0xcd   :  { %1938 = vmatprep.subr.bf16.mxu1 %v2300_v0 }
  0xd0   :  { %1940 = vmatpush3.bf16.msra.mxu1 %v1939_v32 }
  0xd1   :  { %1941 = vmatprep.subr.bf16.mxu1 %v2300_v0 }
  0xd4   :  { %1943 = vmatpush3.bf16.msra.mxu1 %v1942_v35 }
  0xd5   :  { %1944 = vmatprep.subr.bf16.mxu1 %v2300_v0 }
  0xd8   :  { %1946 = vmatpush3.bf16.msra.mxu1 %v1945_v38 }
  0xd9   :  { %1947 = vmatprep.subr.bf16.mxu1 %v2300_v0 }
  0xdc   :  { %1949 = vmatpush3.bf16.msra.mxu1 %v1948_v41 }
  0xdd   :  { %1950 = vmatprep.subr.bf16.mxu1 %v2300_v0 }
  0xe0   :  { %1952 = vmatpush3.bf16.msra.mxu1 %v1951_v44 }
  0xe1   :  { %1953 = vmatprep.subr.bf16.mxu1 %v2300_v0 }
  0xe4   :  { %1955 = vmatpush3.bf16.msra.mxu1 %v1954_v47 }
  0xe5   :  { %1988 = vmatprep.subr.bf16.mxu1 %v2300_v0 }
 0x17a   :  { %v342_v48 = vpop.f32.mrb[0].mxu1 }
 0x17b   :  { %v1655_v49 = vpop.f32.mrb[1].mxu1  ;;  %v343_v17 = vadd.f32 %v342_v48, %v201_v13 }
 0x195   :  { %v477_v61 = vpop.f32.mrb[0].mxu0 }
 0x196   :  { %v2013_v63 = vadd.f32 %v2012_v60, %v477_v61  ;;  %v479_v2 = vpop.f32.mrb[1].mxu0 }
 0x197   :  { %v2015_v4 = vadd.f32 %v2014_v62, %v479_v2  ;;  %v2579_v62 = vld [vmem:[#allocation10 + $0x28] sm:$0xff] }
 0x198   :  { %v1533_v3 = vmul.f32 -1.442695, %v2013_v63 }
 0x199   :  { %v1534_v5 = vmul.f32 -1.442695, %v2015_v4 }
 0x19a   :  { %2039 = vpow2.f32 %v1533_v3  ;;  %v548_v6 = vpop.f32.mrb[2].mxu1  ;;  %v2583_v3 = vld [vmem:[#allocation10 + $0x30] sm:$0xff] }
 0x19b   :  { %v1690_v7 = vpop.f32.mrb[3].mxu1  ;;  %2041 = vpow2.f32 %v1534_v5  ;;  %v549_v15 = vadd.f32 %v548_v6, %v407_v11  ;;  %v2587_v6 = vld [vmem:[#allocation10 + $0x38] sm:$0xff] }
 0x1a4   :  { %v2040_v8 = vpop.eup %2039 }
 0x1a5   :  { %v556_v9 = vadd.f32 1.0, %v2040_v8  ;;  %v2042_v12 = vpop.eup %2041 }
 0x1a6   :  { %v563_v14 = vadd.f32 1.0, %v2042_v12 }
 0x1a7   :  { %2043 = vrcp.f32 %v556_v9  ;;  %v705_v9 = vand.u32 127, %v190_v50 }
 0x1a8   :  { %2045 = vrcp.f32 %v563_v14 }
 0x1a9   :  { %v2593_v12 = vsub.s32 %v705_v9, %v2532_v51 }
 0x1b1   :  { %v2044_v16 = vpop.eup %2043 }
 0x1b2   :  { %v566_v18 = vmul.f32 %v2044_v16, %v549_v15  ;;  %v2046_v23 = vpop.eup %2045 }
 0x1b3   :  { %v569_v25 = vsub.f32 1.0, %v2046_v23  ;;  %v571_v28 = vmul.f32 %v2046_v23, %v2511_v19  ;;  %v2562_v19 = vld [vmem:[#allocation10 + $0x10] sm:$0xff] }
 0x1b4   :  { %v567_v20 = vadd.f32 %v566_v18, %v343_v17 }
 0x1b6   :  { %2047 = vtanh.f32 %v567_v20 }
 0x1c0   :  { %v2048_v26 = vpop.eup %2047 }
 0x1c1   :  { %v570_v27 = vmul.f32 %v2048_v26, %v569_v25 }
 0x1c3   :  { %v572_v30 = vadd.f32 %v571_v28, %v570_v27 }
 0x1c5   :  { %1759 = vmatmul.mubr.f32.vlgmr.msra.gmra.mrb[4].mxu1 %v572_v30  ;;  %573 = vst [vmem:[#allocation18] sm:$0xff] %v572_v30  ;;  %v590_v31 = vrot.slane %v572_v30, %v589_v29  ;;  %v583_v32 = vcombine.high %v572_v30, %v572_v30 }
 0x1c6   :  { %1793 = vmatprep.mubr.msk.f32.mxu1 %vm2302_vm0, %v2301_v1 }
 0x1c7   :  { %v606_v33 = vrot.slane %v590_v31, %v589_v29  ;;  %v598_v34 = vcombine.high %v590_v31, %v590_v31  ;;  %v597_v35 = vrot.slane %v583_v32, %v589_v29 }
 0x1c9   :  { %v635_v37 = vrot.slane %v606_v33, %v2535_v52  ;;  %v628_v38 = vcombine.high %v606_v33, %v606_v33  ;;  %v620_v39 = vrot.slane %v598_v34, %v589_v29  ;;  %v613_v40 = vrot.slane %v597_v35, %v589_v29 }
 0x1ca   :  { %v599_v41 = vcombine.high %v597_v35, %v597_v35 }
 0x1cb   :  { %v672_v42 = vmul.f32 %v635_v37, %v2559_v36  ;;  %v643_v43 = vrot.slane %v628_v38, %v2535_v52  ;;  %v639_v44 = vrot.slane %v620_v39, %v2535_v52  ;;  %v630_v45 = vcombine.high %v620_v39, %v620_v39 }
 0x1cc   :  { %v627_v49 = vrot.slane %v599_v41, %v589_v29  ;;  %v651_v56 = vrot.slane %v613_v40, %v2535_v52  ;;  %v629_v57 = vcombine.high %v613_v40, %v613_v40  ;;  %v2304_v37 = vmov 0  }
 0x1cd   :  { %680 = vadd.xlane.f32.xlu0 %v672_v42  ;;  %v674_v47 = vmul.f32 %v643_v43, %v2562_v19  ;;  %v647_v48 = vrot.slane %v630_v45, %v2535_v52  ;;  %v673_v54 = vmul.f32 %v639_v44, %v2567_v46  ;;  %2037 = vset.pattern.permute.xlu1 %v2304_v37  ;;  %v772_v40 = vsub.s32 3, %v2532_v51 }
 0x1ce   :  { %v655_v60 = vrot.slane %v627_v49, %v2535_v52  ;;  %v631_v61 = vcombine.high %v627_v49, %v627_v49  ;;  %v676_v63 = vmul.f32 %v651_v56, %v2575_v58  ;;  %v659_v2 = vrot.slane %v629_v57, %v2535_v52  ;;  %2038 = vset.pattern.permute.xlu0 %v2304_v37 }
 0x1cf   :  { %684 = vadd.xlane.f32.xlu1 %v674_v47  ;;  %v675_v59 = vmul.f32 %v647_v48, %v2571_v53  ;;  %v776_v45 = vsub.s32 4, %v2532_v51 }
 0x1d0   :  { %v677_v4 = vmul.f32 %v655_v60, %v2579_v62  ;;  %v663_v5 = vrot.slane %v631_v61, %v2535_v52  ;;  %v678_v7 = vmul.f32 %v659_v2, %v2583_v3  ;;  %v784_v2 = vsub.s32 6, %v2532_v51 }
 0x1d1   :  { %682 = vadd.xlane.f32.xlu0 %v673_v54 }
 0x1d2   :  { %v679_v8 = vmul.f32 %v663_v5, %v2587_v6 }
 0x1d3   :  { %686 = vadd.xlane.f32.xlu1 %v675_v59  ;;  %v780_v59 = vsub.s32 5, %v2532_v51 }
 0x1d5   :  { %688 = vadd.xlane.f32.xlu0 %v676_v63 }
 0x1d7   :  { %690 = vadd.xlane.f32.xlu1 %v677_v4 }
 0x1d9   :  { %692 = vadd.xlane.f32.xlu0 %v678_v7 }
 0x1db   :  { %694 = vadd.xlane.f32.xlu1 %v679_v8  ;;  %v788_v8 = vsub.s32 7, %v2532_v51  ;;  %v1068_v51 = vld [vmem:[#allocation14 + $0xc0] sm:$0xff] }
 0x25a   :  { %v681_v11 = vpop.xlane.xlu0 %680 }
 0x25b   :  { %v709_v15 = vrot.slane %v681_v11, %v2593_v12 }
 0x25c   :  { %v685_v13 = vpop.xlane.xlu1 %684 }
 0x25d   :  { %v717_v17 = vrot.slane %v685_v13, %v2593_v12 }
 0x25e   :  { %v683_v14 = vpop.xlane.xlu0 %682 }
 0x25f   :  { %v713_v16 = vrot.slane %v683_v14, %v2593_v12 }
 0x260   :  { %v687_v18 = vpop.xlane.xlu1 %686 }
 0x261   :  { %v739_v20 = vsel %vm738_vm1, %v713_v16, %v709_v15  ;;  %v721_v50 = vrot.slane %v687_v18, %v2593_v12 }
 0x262   :  { %v741_v21 = vsel %vm740_vm2, %v717_v17, %v739_v20  ;;  %v689_v22 = vpop.xlane.xlu0 %688 }
 0x263   :  { %v743_v23 = vsel %vm742_vm3, %v721_v50, %v741_v21  ;;  %v725_v24 = vrot.slane %v689_v22, %v2593_v12 }
 0x264   :  { %v691_v25 = vpop.xlane.xlu1 %690 }
 0x265   :  { %v745_v26 = vsel %vm744_vm4, %v725_v24, %v743_v23  ;;  %v729_v27 = vrot.slane %v691_v25, %v2593_v12 }
 0x266   :  { %v693_v28 = vpop.xlane.xlu0 %692 }
 0x267   :  { %v733_v29 = vrot.slane %v693_v28, %v2593_v12  ;;  %v747_v30 = vsel %vm746_vm5, %v729_v27, %v745_v26 }
 0x268   :  { %v695_v31 = vpop.xlane.xlu1 %694 }
 0x269   :  { %v737_v32 = vrot.slane %v695_v31, %v2593_v12  ;;  %v749_v33 = vsel %vm748_vm6, %v733_v29, %v747_v30 }
 0x26b   :  { %v751_v34 = vsel %vm750_vm7, %v737_v32, %v749_v33 }
 0x26c   :  { %v754_v35 = vsel %vm753_vm8, %v751_v34, -inf }
 0x26d   :  { %755 = vmax.xlane.f32.xlu0 %v754_v35 }
 0x298   :  { %v2611_v38 = vpop.f32.mrb[4].mxu1 }
 0x299   :  { %v1760_v39 = vpop.f32.mrb[5].mxu1 }
 0x2fa   :  { %v756_v41 = vpop.xlane.xlu0 %755 }
 0x2fb   :  { %v761_v42 = vrot.slane %v756_v41, %v2535_v52  ;;  %v765_v43 = vrot.slane %v756_v41, %v2544_v55  ;;  %v769_v44 = vrot.slane %v756_v41, %v2551_v10  ;;  %v773_v47 = vrot.slane %v756_v41, %v772_v40 }
 0x2fc   :  { %v777_v60 = vrot.slane %v756_v41, %v776_v45  ;;  %v781_v4 = vrot.slane %v756_v41, %v780_v59  ;;  %v785_v9 = vrot.slane %v756_v41, %v784_v2  ;;  %v789_v16 = vrot.slane %v756_v41, %v788_v8 }
 0x2fd   :  { %v798_v48 = vsub.f32 %v681_v11, %v761_v42  ;;  %v799_v49 = vsub.f32 %v683_v14, %v765_v43  ;;  %v800_v54 = vsub.f32 %v685_v13, %v769_v44  ;;  %v801_v61 = vsub.f32 %v687_v18, %v773_v47 }
 0x2fe   :  { %v802_v5 = vsub.f32 %v689_v22, %v777_v60  ;;  %v803_v11 = vsub.f32 %v691_v25, %v781_v4  ;;  %v804_v17 = vsub.f32 %v693_v28, %v785_v9  ;;  %v805_v50 = vsub.f32 %v695_v31, %v789_v16 }
 0x2ff   :  { %v806_v56 = vmul.f32 1.442695, %v798_v48  ;;  %v808_v57 = vmul.f32 1.442695, %v799_v49  ;;  %v810_v63 = vmul.f32 1.442695, %v800_v54 }
 0x300   :  { %v812_v7 = vmul.f32 1.442695, %v801_v61  ;;  %v814_v13 = vmul.f32 1.442695, %v802_v5  ;;  %v816_v18 = vmul.f32 1.442695, %v803_v11 }
 0x301   :  { %2049 = vpow2.f32 %v806_v56  ;;  %v818_v21 = vmul.f32 1.442695, %v804_v17  ;;  %v820_v23 = vmul.f32 1.442695, %v805_v50 }
 0x302   :  { %2051 = vpow2.f32 %v808_v57 }
 0x303   :  { %2053 = vpow2.f32 %v810_v63 }
 0x304   :  { %2055 = vpow2.f32 %v812_v7 }
 0x305   :  { %2057 = vpow2.f32 %v814_v13 }
 0x306   :  { %2059 = vpow2.f32 %v816_v18 }
 0x307   :  { %2061 = vpow2.f32 %v818_v21 }
 0x308   :  { %2063 = vpow2.f32 %v820_v23 }
 0x30b   :  { %v2050_v14 = vpop.eup %2049 }
 0x30c   :  { %v2052_v15 = vpop.eup %2051  ;;  %831 = vperm.xlu1 %2037, %v2050_v14  }
 0x30d   :  { %834 = vperm.xlu0 %2038, %v2052_v15   ;;  %v2054_v20 = vpop.eup %2053 }
 0x30e   :  { %v2056_v22 = vpop.eup %2055 }
 0x30f   :  { %v2058_v24 = vpop.eup %2057 }
 0x310   :  { %837 = vperm.xlu1 %2037, %v2054_v20   ;;  %v2060_v25 = vpop.eup %2059 }
 0x311   :  { %v2062_v26 = vpop.eup %2061 }
 0x312   :  { %v2631_v27 = vpop.eup %2063 }
 0x314   :  { %840 = vperm.xlu1 %2037, %v2056_v22  }
 0x318   :  { %843 = vperm.xlu1 %2037, %v2058_v24  }
 0x31c   :  { %846 = vperm.xlu1 %2037, %v2060_v25  }
 0x320   :  { %849 = vperm.xlu1 %2037, %v2062_v26  }
 0x324   :  { %852 = vperm.xlu1 %2037, %v2631_v27  }
 0x38b   :  { %v832_v28 = vpop.permute.xlu1 %831 }
 0x38c   :  { %v835_v32 = vpop.permute.xlu0 %834  ;;  %v857_v35 = vrot.slane %v832_v28, %v2593_v12  ;;  %v1060_v28 = vld [vmem:[#allocation14 + $0x80] sm:$0xff] }
 0x38d   :  { %v861_v34 = vrot.slane %v835_v32, %v2593_v12 }
 0x38f   :  { %v838_v29 = vpop.permute.xlu1 %837  ;;  %v886_v43 = vsel %vm738_vm1, %v861_v34, %v857_v35  ;;  %v1067_v34 = vld [vmem:[#allocation14 + $0xb8] sm:$0xff] }
 0x390   :  { %v865_v37 = vrot.slane %v838_v29, %v2593_v12 }
 0x392   :  { %v887_v47 = vsel %vm740_vm2, %v865_v37, %v886_v43  ;;  %v1070_v37 = vld [vmem:[#allocation14 + $0xd0] sm:$0xff] }
 0x393   :  { %v841_v30 = vpop.permute.xlu1 %840  ;;  %v1074_v43 = vld [vmem:[#allocation14 + $0xf0] sm:$0xff] }
 0x394   :  { %v869_v39 = vrot.slane %v841_v30, %v2593_v12 }
 0x396   :  { %v888_v49 = vsel %vm742_vm3, %v869_v39, %v887_v47  ;;  %v1071_v39 = vld [vmem:[#allocation14 + $0xd8] sm:$0xff] }
 0x397   :  { %v844_v31 = vpop.permute.xlu1 %843  ;;  %v1075_v47 = vld [vmem:[#allocation14 + $0xf8] sm:$0xff] }
 0x398   :  { %v873_v41 = vrot.slane %v844_v31, %v2593_v12 }
 0x39a   :  { %v889_v54 = vsel %vm744_vm4, %v873_v41, %v888_v49  ;;  %v1924_v41 = vpack.c.bf16 %v1071_v39, %v1070_v37  ;;  %v1247_v49 = vld [vmem:[#allocation16 + $0x8] sm:$0xff] }
 0x39b   :  { %v847_v33 = vpop.permute.xlu1 %846 }
 0x39c   :  { %v877_v44 = vrot.slane %v847_v33, %v2593_v12  ;;  %v1066_v33 = vld [vmem:[#allocation14 + $0xb0] sm:$0xff] }
 0x39d   :  { %v1918_v35 = vpack.c.bf16 %v1067_v34, %v1066_v33 }
 0x39e   :  { %v890_v57 = vsel %vm746_vm5, %v877_v44, %v889_v54  ;;  %v1250_v54 = vld [vmem:[#allocation16 + $0x20] sm:$0xff] }
 0x39f   :  { %v850_v42 = vpop.permute.xlu1 %849 }
 0x3a0   :  { %v881_v48 = vrot.slane %v850_v42, %v2593_v12  ;;  %v1073_v42 = vld [vmem:[#allocation14 + $0xe8] sm:$0xff] }
 0x3a2   :  { %v891_v61 = vsel %vm748_vm6, %v881_v48, %v890_v57  ;;  %v1930_v48 = vpack.c.bf16 %v1075_v47, %v1074_v43  ;;  %v1248_v57 = vld [vmem:[#allocation16 + $0x10] sm:$0xff] }
 0x3a3   :  { %v853_v56 = vpop.permute.xlu1 %852 }
 0x3a4   :  { %v885_v60 = vrot.slane %v853_v56, %v2593_v12  ;;  %v1956_v56 = vpack.c.bf16 %v1250_v54, %v1247_v49 }
 0x3a6   :  { %v892_v63 = vsel %vm750_vm7, %v885_v60, %v891_v61  ;;  %v1251_v60 = vld [vmem:[#allocation16 + $0x28] sm:$0xff] }
 0x3a7   :  { %v894_v4 = vsel %vm753_vm8, %v892_v63, 0.0  ;;  %v1989_v61 = vpack.c.bf16 %v1251_v60, %v1248_v57  ;;  %v1254_v63 = vld [vmem:[#allocation16 + $0x40] sm:$0xff] }
 0x3a8   :  { %895 = vadd.xlane.f32.xlu1 %v894_v4  ;;  %v1257_v4 = vld [vmem:[#allocation16 + $0x58] sm:$0xff] }
 0x3a9   :  { %1990 = vmatpush3.bf16.msra.mxu1 %v1989_v61 }
 0x3aa   :  { %1991 = vmatprep.subr.bf16.mxu1 %v2300_v0 }
 0x435   :  { %v896_v5 = vpop.xlane.xlu1 %895 }
 0x436   :  { %2065 = vrcp.f32 %v896_v5  ;;  %v1992_v5 = vpack.c.bf16 %v1257_v4, %v1254_v63 }
 0x438   :  { %1993 = vmatpush3.bf16.msra.mxu1 %v1992_v5 }
 0x439   :  { %1994 = vmatprep.subr.bf16.mxu1 %v2300_v0 }
 0x440   :  { %v2066_v7 = vpop.eup %2065 }
 0x441   :  { %v902_v9 = vrot.slane %v2066_v7, %v2535_v52  ;;  %v906_v13 = vrot.slane %v2066_v7, %v2544_v55  ;;  %v910_v17 = vrot.slane %v2066_v7, %v2551_v10  ;;  %v914_v18 = vrot.slane %v2066_v7, %v772_v40  ;;  %v1062_v40 = vld [vmem:[#allocation14 + $0x90] sm:$0xff] }
 0x442   :  { %v918_v21 = vrot.slane %v2066_v7, %v776_v45 }
 0x443   :  { %v939_v11 = vmul.f32 %v2050_v14, %v902_v9  ;;  %v940_v16 = vmul.f32 %v2052_v15, %v906_v13  ;;  %v941_v12 = vmul.f32 %v2054_v20, %v910_v17  ;;  %v942_v50 = vmul.f32 %v2056_v22, %v914_v18  ;;  %v1061_v15 = vld [vmem:[#allocation14 + $0x88] sm:$0xff]  ;;  %v1063_v22 = vld [vmem:[#allocation14 + $0x98] sm:$0xff]  ;;  %v1266_v13 = vld [vmem:[#allocation16 + $0xa0] sm:$0xff] }
 0x444   :  { %v943_v23 = vmul.f32 %v2058_v24, %v918_v21  ;;  %v922_v14 = vrot.slane %v2066_v7, %v780_v59  ;;  %v1909_v29 = vpack.c.bf16 %v1061_v15, %v1060_v28  ;;  %v926_v20 = vrot.slane %v2066_v7, %v784_v2  ;;  %v1064_v59 = vld [vmem:[#allocation14 + $0xa0] sm:$0xff]  ;;  %v1263_v9 = vld [vmem:[#allocation16 + $0x88] sm:$0xff] }
 0x445   :  { %949 = vperm.xlu0 %2038, %v939_v11   ;;  %v1912_v45 = vpack.c.bf16 %v1063_v22, %v1062_v40  ;;  %v930_v24 = vrot.slane %v2066_v7, %v788_v8  ;;  %v1069_v8 = vld [vmem:[#allocation14 + $0xc8] sm:$0xff]  ;;  %v1260_v7 = vld [vmem:[#allocation16 + $0x70] sm:$0xff] }
 0x446   :  { %v944_v30 = vmul.f32 %v2060_v25, %v922_v14  ;;  %1910 = vmatpush3.bf16.msra.mxu0 %v1909_v29  ;;  %v945_v31 = vmul.f32 %v2062_v26, %v926_v20  ;;  %v1065_v25 = vld [vmem:[#allocation14 + $0xa8] sm:$0xff]  ;;  %v1921_v26 = vpack.c.bf16 %v1069_v8, %v1068_v51  ;;  %v1995_v11 = vpack.c.bf16 %v1263_v9, %v1260_v7 }
 0x447   :  { %1911 = vmatprep.subr.bf16.mxu0 %v2300_v0  ;;  %v1915_v32 = vpack.c.bf16 %v1065_v25, %v1064_v59  ;;  %v946_v2 = vmul.f32 %v2631_v27, %v930_v24  ;;  %v1072_v27 = vld [vmem:[#allocation14 + $0xe0] sm:$0xff] }
 0x448   :  { %v1927_v44 = vpack.c.bf16 %v1073_v42, %v1072_v27  ;;  %1996 = vmatpush3.bf16.msra.mxu1 %v1995_v11 }
 0x449   :  { %954 = vperm.xlu0 %2038, %v940_v16   ;;  %1997 = vmatprep.subr.bf16.mxu1 %v2300_v0  ;;  %v1269_v16 = vld [vmem:[#allocation16 + $0xb8] sm:$0xff] }
 0x44a   :  { %1913 = vmatpush3.bf16.msra.mxu0 %v1912_v45  ;;  %v1998_v17 = vpack.c.bf16 %v1269_v16, %v1266_v13 }
 0x44b   :  { %1914 = vmatprep.subr.bf16.mxu0 %v2300_v0 }
 0x44c   :  { %1999 = vmatpush3.bf16.msra.mxu1 %v1998_v17 }
 0x44d   :  { %959 = vperm.xlu0 %2038, %v941_v12   ;;  %2000 = vmatprep.subr.bf16.mxu1 %v2300_v0 }
 0x44e   :  { %1916 = vmatpush3.bf16.msra.mxu0 %v1915_v32 }
 0x44f   :  { %1917 = vmatprep.subr.bf16.mxu0 %v2300_v0 }
 0x451   :  { %964 = vperm.xlu0 %2038, %v942_v50  }
 0x452   :  { %1919 = vmatpush3.bf16.msra.mxu0 %v1918_v35 }
 0x453   :  { %1920 = vmatprep.subr.bf16.mxu0 %v2300_v0 }
 0x455   :  { %969 = vperm.xlu0 %2038, %v943_v23  }
 0x456   :  { %1922 = vmatpush3.bf16.msra.mxu0 %v1921_v26 }
 0x457   :  { %1923 = vmatprep.subr.bf16.mxu0 %v2300_v0 }
 0x459   :  { %974 = vperm.xlu0 %2038, %v944_v30  }
 0x45a   :  { %1925 = vmatpush3.bf16.msra.mxu0 %v1924_v41 }
 0x45b   :  { %1926 = vmatprep.subr.bf16.mxu0 %v2300_v0 }
 0x45d   :  { %979 = vperm.xlu0 %2038, %v945_v31  }
 0x45e   :  { %1928 = vmatpush3.bf16.msra.mxu0 %v1927_v44 }
 0x45f   :  { %1929 = vmatprep.subr.bf16.mxu0 %v2300_v0 }
 0x461   :  { %984 = vperm.xlu0 %2038, %v946_v2  }
 0x462   :  { %1931 = vmatpush3.bf16.msra.mxu0 %v1930_v48 }
 0x463   :  { %1957 = vmatprep.subr.bf16.mxu0 %v1956_v56 }
 0x4c4   :  { %v950_v12 = vpop.permute.xlu0 %949 }
 0x4c5   :  { %v987_v14 = vmul.f32 %v950_v12, %v2559_v36 }
 0x4c7   :  { %v995_v20 = vrot.slane %v987_v14, 4 }
 0x4c8   :  { %v955_v18 = vpop.permute.xlu0 %954 }
 0x4c9   :  { %v988_v21 = vmul.f32 %v955_v18, %v2567_v46  ;;  %v996_v59 = vadd.f32 %v995_v20, %v987_v14  ;;  %v1253_v20 = vld [vmem:[#allocation16 + $0x38] sm:$0xff] }
 0x4cb   :  { %v1001_v15 = vrot.slane %v988_v21, 4  ;;  %v997_v34 = vrot.slane %v996_v59, 2 }
 0x4cc   :  { %v960_v50 = vpop.permute.xlu0 %959 }
 0x4cd   :  { %v989_v23 = vmul.f32 %v960_v50, %v2562_v19  ;;  %v1002_v45 = vadd.f32 %v1001_v15, %v988_v21  ;;  %v998_v41 = vadd.f32 %v997_v34, %v996_v59  ;;  %v1249_v15 = vld [vmem:[#allocation16 + $0x18] sm:$0xff] }
 0x4cf   :  { %v1007_v30 = vrot.slane %v989_v23, 4  ;;  %v1003_v2 = vrot.slane %v1002_v45, 2  ;;  %v999_v57 = vrot.slane %v998_v41, 1 }
 0x4d0   :  { %v965_v28 = vpop.permute.xlu0 %964 }
 0x4d1   :  { %v990_v29 = vmul.f32 %v965_v28, %v2571_v53  ;;  %v1008_v24 = vadd.f32 %v1007_v30, %v989_v23  ;;  %v1004_v26 = vadd.f32 %v1003_v2, %v1002_v45  ;;  %v1000_v13 = vadd.f32 %v999_v57, %v998_v41  ;;  %v1246_v28 = vld [vmem:[#allocation16] sm:$0xff] }
 0x4d3   :  { %v1013_v40 = vrot.slane %v990_v29, 4  ;;  %v1009_v33 = vrot.slane %v1008_v24, 2  ;;  %v1005_v48 = vrot.slane %v1004_v26, 1 }
 0x4d4   :  { %v970_v22 = vpop.permute.xlu0 %969 }
 0x4d5   :  { %v991_v31 = vmul.f32 %v970_v22, %v2575_v58  ;;  %v1014_v25 = vadd.f32 %v1013_v40, %v990_v29  ;;  %v1010_v58 = vadd.f32 %v1009_v33, %v1008_v24  ;;  %v1006_v5 = vadd.f32 %v1005_v48, %v1004_v26  ;;  %v1256_v40 = vld [vmem:[#allocation16 + $0x50] sm:$0xff] }
 0x4d6   :  { %v1958_v24 = vpack.c.bf16 %v1249_v15, %v1246_v28  ;;  %v1272_v48 = vld [vmem:[#allocation16 + $0xd0] sm:$0xff]  ;;  %v1291_v15 = vld [vmem:[#allocation16 + $0x168] sm:$0xff] }
 0x4d7   :  { %v1019_v32 = vrot.slane %v991_v31, 4  ;;  %v1015_v35 = vrot.slane %v1014_v25, 2  ;;  %v1011_v56 = vrot.slane %v1010_v58, 1  ;;  %v1084_v50 = vsel %vm738_vm1, %v1006_v5, %v1000_v13  ;;  %v1288_v28 = vld [vmem:[#allocation16 + $0x150] sm:$0xff] }
 0x4d8   :  { %v975_v46 = vpop.permute.xlu0 %974 }
 0x4d9   :  { %v1020_v19 = vadd.f32 %v1019_v32, %v991_v31  ;;  %v992_v36 = vmul.f32 %v975_v46, %v2579_v62  ;;  %v1016_v27 = vadd.f32 %v1015_v35, %v1014_v25  ;;  %v1012_v11 = vadd.f32 %v1011_v56, %v1010_v58  ;;  %v1252_v32 = vld [vmem:[#allocation16 + $0x30] sm:$0xff]  ;;  %v1255_v46 = vld [vmem:[#allocation16 + $0x48] sm:$0xff]  ;;  %v1258_v35 = vld [vmem:[#allocation16 + $0x60] sm:$0xff] }
 0x4da   :  { %v1960_v25 = vpack.c.bf16 %v1256_v40, %v1253_v20  ;;  %v1962_v33 = vpack.c.bf16 %v1255_v46, %v1252_v32  ;;  %v1267_v58 = vld [vmem:[#allocation16 + $0xa8] sm:$0xff]  ;;  %v1280_v56 = vld [vmem:[#allocation16 + $0x110] sm:$0xff]  ;;  %v1986_v20 = vpack.c.bf16 %v1291_v15, %v1288_v28  ;;  %v2305_v32 = vmov -inf  }
 0x4db   :  { %v1025_v53 = vrot.slane %v992_v36, 4  ;;  %v1021_v51 = vrot.slane %v1020_v19, 2  ;;  %v1017_v60 = vrot.slane %v1016_v27, 1  ;;  %v1085_v23 = vsel %vm740_vm2, %v1012_v11, %v1084_v50  ;;  %v1289_v50 = vld [vmem:[#allocation16 + $0x158] sm:$0xff]  ;;  %1243 = vst.msk [vmem:[#allocation3] sm:$0xff] %vm1242_vm9, %v2305_v32 }
 0x4dc   :  { %v980_v8 = vpop.permute.xlu0 %979 }
 0x4dd   :  { %v1026_v37 = vadd.f32 %v1025_v53, %v992_v36  ;;  %v993_v39 = vmul.f32 %v980_v8, %v2583_v3  ;;  %v1022_v44 = vadd.f32 %v1021_v51, %v1020_v19  ;;  %v1018_v16 = vadd.f32 %v1017_v60, %v1016_v27  ;;  %v1259_v19 = vld [vmem:[#allocation16 + $0x68] sm:$0xff]  ;;  %v1262_v36 = vld [vmem:[#allocation16 + $0x80] sm:$0xff]  ;;  %v1261_v53 = vld [vmem:[#allocation16 + $0x78] sm:$0xff] }
 0x4de   :  { %v1964_v34 = vpack.c.bf16 %v1262_v36, %v1259_v19  ;;  %v1265_v51 = vld [vmem:[#allocation16 + $0x98] sm:$0xff]  ;;  %v1268_v8 = vld [vmem:[#allocation16 + $0xb0] sm:$0xff]  ;;  %v1966_v26 = vpack.c.bf16 %v1261_v53, %v1258_v35  ;;  %v1271_v27 = vld [vmem:[#allocation16 + $0xc8] sm:$0xff] }
 0x4df   :  { %v1027_v42 = vrot.slane %v1026_v37, 2  ;;  %v1031_v43 = vrot.slane %v993_v39, 4  ;;  %v1023_v4 = vrot.slane %v1022_v44, 1  ;;  %v1086_v29 = vsel %vm742_vm3, %v1018_v16, %v1085_v23  ;;  %v1282_v16 = vld [vmem:[#allocation16 + $0x120] sm:$0xff] }
 0x4e0   :  { %v985_v47 = vpop.permute.xlu0 %984 }
 0x4e1   :  { %v1028_v49 = vadd.f32 %v1027_v42, %v1026_v37  ;;  %v1032_v62 = vadd.f32 %v1031_v43, %v993_v39  ;;  %v994_v54 = vmul.f32 %v985_v47, %v2587_v6  ;;  %v1024_v18 = vadd.f32 %v1023_v4, %v1022_v44  ;;  %v1264_v39 = vld [vmem:[#allocation16 + $0x90] sm:$0xff]  ;;  %v1274_v42 = vld [vmem:[#allocation16 + $0xe0] sm:$0xff]  ;;  %v1273_v47 = vld [vmem:[#allocation16 + $0xd8] sm:$0xff] }
 0x4e2   :  { %v1968_v37 = vpack.c.bf16 %v1268_v8, %v1265_v51  ;;  %v1970_v41 = vpack.c.bf16 %v1267_v58, %v1264_v39  ;;  %v1972_v43 = vpack.c.bf16 %v1274_v42, %v1271_v27  ;;  %v1270_v44 = vld [vmem:[#allocation16 + $0xc0] sm:$0xff] }
 0x4e3   :  { %v1033_v61 = vrot.slane %v1032_v62, 2  ;;  %v1037_v63 = vrot.slane %v994_v54, 4  ;;  %v1029_v3 = vrot.slane %v1028_v49, 1  ;;  %v1087_v22 = vsel %vm744_vm4, %v1024_v18, %v1086_v29  ;;  %v1278_v4 = vld [vmem:[#allocation16 + $0x100] sm:$0xff]  ;;  %v1287_v18 = vld [vmem:[#allocation16 + $0x148] sm:$0xff] }
 0x4e4   :  { %v1290_v29 = vld [vmem:[#allocation16 + $0x160] sm:$0xff] }
 0x4e5   :  { %v1034_v7 = vadd.f32 %v1033_v61, %v1032_v62  ;;  %v1038_v9 = vadd.f32 %v1037_v63, %v994_v54  ;;  %v1030_v21 = vadd.f32 %v1029_v3, %v1028_v49  ;;  %v1974_v49 = vpack.c.bf16 %v1273_v47, %v1270_v44  ;;  %v1275_v62 = vld [vmem:[#allocation16 + $0xe8] sm:$0xff]  ;;  %v1277_v54 = vld [vmem:[#allocation16 + $0xf8] sm:$0xff]  ;;  %v1276_v61 = vld [vmem:[#allocation16 + $0xf0] sm:$0xff] }
 0x4e6   :  { %v2001_v57 = vpack.c.bf16 %v1275_v62, %v1272_v48  ;;  %v1976_v60 = vpack.c.bf16 %v1280_v56, %v1277_v54  ;;  %v1279_v63 = vld [vmem:[#allocation16 + $0x108] sm:$0xff]  ;;  %v1281_v3 = vld [vmem:[#allocation16 + $0x118] sm:$0xff] }
 0x4e7   :  { %v1035_v17 = vrot.slane %v1034_v7, 1  ;;  %v1039_v12 = vrot.slane %v1038_v9, 2  ;;  %v1088_v31 = vsel %vm746_vm5, %v1030_v21, %v1087_v22  ;;  %v1978_v5 = vpack.c.bf16 %v1279_v63, %v1276_v61  ;;  %v1292_v21 = vld [vmem:[#allocation16 + $0x170] sm:$0xff] }
 0x4e8   :  { %2002 = vmatpush3.bf16.msra.mxu1 %v2001_v57  ;;  %v2004_v11 = vpack.c.bf16 %v1281_v3, %v1278_v4 }
 0x4e9   :  { %v1040_v6 = vadd.f32 %v1039_v12, %v1038_v9  ;;  %v1036_v14 = vadd.f32 %v1035_v17, %v1034_v7  ;;  %v1283_v7 = vld [vmem:[#allocation16 + $0x128] sm:$0xff]  ;;  %v1286_v9 = vld [vmem:[#allocation16 + $0x140] sm:$0xff]  ;;  %v1285_v17 = vld [vmem:[#allocation16 + $0x138] sm:$0xff]  ;;  %2003 = vmatprep.subr.bf16.mxu1 %v2300_v0 }
 0x4ea   :  { %v1980_v13 = vpack.c.bf16 %v1286_v9, %v1283_v7  ;;  %v1284_v12 = vld [vmem:[#allocation16 + $0x130] sm:$0xff] }
 0x4eb   :  { %v1041_v30 = vrot.slane %v1040_v6, 1  ;;  %v1089_v59 = vsel %vm748_vm6, %v1036_v14, %v1088_v31  ;;  %v2007_v23 = vpack.c.bf16 %v1287_v18, %v1284_v12  ;;  %v1984_v14 = vpack.c.bf16 %v1292_v21, %v1289_v50 }
 0x4ec   :  { %2005 = vmatpush3.bf16.msra.mxu1 %v2004_v11 }
 0x4ed   :  { %v1042_v45 = vadd.f32 %v1041_v30, %v1040_v6  ;;  %v1982_v6 = vpack.c.bf16 %v1285_v17, %v1282_v16  ;;  %2006 = vmatprep.subr.bf16.mxu1 %v2300_v0  ;;  %v1293_v30 = vld [vmem:[#allocation16 + $0x178] sm:$0xff] }
 0x4ee   :  { %v2010_v40 = vpack.c.bf16 %v1293_v30, %v1290_v29 }
 0x4ef   :  { %v1090_v2 = vsel %vm750_vm7, %v1042_v45, %v1089_v59  ;;  %v1535_v45 = vld [vmem:[%s2745_s8] ss:$0 sm:$0xff]  ;;  %s2306_s8 = smov [#allocation17]  }
 0x4f0   :  { %1724 = vmatmul.mubr.f32.vlgmr.msra.gmra.mrb[2].mxu0 %v1090_v2  ;;  %2008 = vmatpush3.bf16.msra.mxu1 %v2007_v23 }
 0x4f1   :  { %1959 = vmatpush1.bf16.msra.mxu0 %v1958_v24  ;;  %1375 = vmatprep.mubr.f32.mxu0 %v2301_v1 }
 0x4f2   :  { %1961 = vmatprep.subr.bf16.mxu0 %v1960_v25  ;;  %2009 = vmatprep.subr.bf16.mxu1 %v2300_v0  ;;  %v1294_v0 = vld [vmem:[%s2747_s10] sm:$0x7]  ;;  %s1503_s10 = sshll.u32 %s2306_s8, 4  ;;  %s1504_s10 = int_to_ptr.vmem [resolvable:$true] %s1503_s10 }
 0x4f3   :  { %v1299_v46 = vrot.slane %v1294_v0, %v2535_v52  ;;  %v1303_v2 = vrot.slane %v1294_v0, %v2544_v55  ;;  %s2233_s16 = scalar_lea.vmem %s1504_s10, 384  ;;  %p2238_p1 = scmp.lt.s32.totalorder %s1504_s10, %s1504_s10 }
 0x4f4   :  { %2011 = vmatpush3.bf16.msra.mxu1 %v2010_v40  ;;  %p2234_p0 = scmp.ne.s32.totalorder %s1504_s10, %s2233_s16  ;;  %p2239_p2 = scmp.lt.s32.totalorder %s2233_s16, %s2233_s16 }
 0x4f5   :  { %1963 = vmatpush1.bf16.msra.mxu0 %v1962_v33 }
 0x4f6   :  { %1965 = vmatprep.subr.bf16.mxu0 %v1964_v34  ;;  %p2240_p3 = por %p2239_p2, %p2238_p1 }
 0x4f8   :  { %p2241_p4 = pnand %p2240_p3, %p2234_p0 }
 0x4f9   :  { %1967 = vmatpush1.bf16.msra.mxu0 %v1966_v26  ;;  %v1455_v26 = vld [vmem:[#allocation3] sm:$0xff] }
 0x4fa   :  { %1969 = vmatprep.subr.bf16.mxu0 %v1968_v37 }
 0x4fd   :  { %1971 = vmatpush1.bf16.msra.mxu0 %v1970_v41 }
 0x4fe   :  { %1973 = vmatprep.subr.bf16.mxu0 %v1972_v43 }
 0x501   :  { %1975 = vmatpush1.bf16.msra.mxu0 %v1974_v49 }
 0x502   :  { %1977 = vmatprep.subr.bf16.mxu0 %v1976_v60 }
 0x505   :  { %1979 = vmatpush1.bf16.msra.mxu0 %v1978_v5 }
 0x506   :  { %1981 = vmatprep.subr.bf16.mxu0 %v1980_v13 }
 0x509   :  { %1983 = vmatpush1.bf16.msra.mxu0 %v1982_v6 }
 0x50a   :  { %1985 = vmatprep.subr.bf16.mxu0 %v1984_v14 }
 0x50d   :  { %1987 = vmatpush1.bf16.msra.mxu0 %v1986_v20 }
 0x5c3   :  { %v1158_v22 = vpop.f32.mrb[2].mxu0 }
 0x5c4   :  { %v1229_v31 = vadd.f32 %v2611_v38, %v1158_v22  ;;  %v1725_v24 = vpop.f32.mrb[3].mxu0  ;;  %v1307_v38 = vrot.slane %v1294_v0, %v2551_v10 }
 0x5c6   :  { %v1239_v59 = vadd.f32 %v1535_v45, %v1229_v31 }
 0x5c8   :  { %2067 = vtanh.f32 %v1239_v59 }
 0x5d2   :  { %v2068_v25 = vpop.eup %2067 }
 0x5d3   :  { %1376 = vmatmul.mubr.f32.vlgmr.msra.gmra.mrb[4].mxu0 %v2068_v25  ;;  %1794 = vmatmul.mubr.f32.vlgmr.msra.gmra.mrb[6].mxu1 %v2068_v25 }
 0x6a6   :  { %v1377_v19 = vpop.f32.mrb[4].mxu0  ;;  %v1448_v36 = vpop.f32.mrb[6].mxu1 }
 0x6a7   :  { %v1378_v33 = vadd.f32 %v1377_v19, %v1299_v46  ;;  %v1449_v34 = vadd.f32 %v1448_v36, %v1307_v38  ;;  %v1379_v35 = vpop.f32.mrb[5].mxu0  ;;  %v1795_v53 = vpop.f32.mrb[7].mxu1 }
 0x6a8   :  { %v1380_v51 = vadd.f32 %v1379_v35, %v1303_v2 }
 0x6a9   :  { %1452 = vst [vmem:[#allocation17] sm:$0xff] %v1378_v33  ;;  %1454 = vst [vmem:[#allocation17 + $0x10] sm:$0xff] %v1449_v34 }
 0x6aa   :  { %1453 = vst [vmem:[#allocation17 + $0x8] sm:$0xff] %v1380_v51  ;;  %v1456_v1 = vmax.f32 %v1378_v33, %v1380_v51 }
 0x6ac   :  { %v1457_v8 = vmax.f32 %v1456_v1, %v1449_v34 }
 0x6ae   :  { %1458 = vmax.xlane.f32.xlu1 %v1457_v8 }
 0x73b   :  { %v1459_v37 = vpop.xlane.xlu1 %1458 }
 0x73c   :  { %v1460_v52 = vmax.f32 %v1455_v26, %v1459_v37 }
 0x73e   :  { %v1462_v39 = vsub.f32 %v1455_v26, %v1460_v52  ;;  %1487 = vst.msk [vmem:[#allocation3] sm:$0xff] %vm1242_vm9, %v1460_v52  ;;  %1468 = vperm.xlu0 %2038, %v1460_v52  }
 0x7bd   :  { %v1469_v55 = vpop.permute.xlu0 %1468 }
 0x7be   :  { %v1471_v10 = vsub.f32 %v1378_v33, %v1469_v55  ;;  %v1472_v58 = vsub.f32 %v1380_v51, %v1469_v55  ;;  %v1473_v41 = vsub.f32 %v1449_v34, %v1469_v55 }
 0x7c0   :  { %v1474_v27 = vmul.f32 1.442695, %v1471_v10  ;;  %v1476_v42 = vmul.f32 1.442695, %v1472_v58  ;;  %v1478_v43 = vmul.f32 1.442695, %v1473_v41 }
 0x7c2   :  { %2069 = vpow2.f32 %v1474_v27 }
 0x7c3   :  { %2071 = vpow2.f32 %v1476_v42 }
 0x7c4   :  { %2073 = vpow2.f32 %v1478_v43 }
 0x7cc   :  { %v2070_v44 = vpop.eup %2069 }
 0x7cd   :  { %v2072_v47 = vpop.eup %2071 }
 0x7ce   :  { %v1480_v48 = vadd.f32 %v2072_v47, %v2070_v44  ;;  %v2074_v49 = vpop.eup %2073 }
 0x7d0   :  { %v1481_v62 = vadd.f32 %v2074_v49, %v1480_v48 }
 0x7d2   :  { %1482 = vadd.xlane.f32.xlu1 %v1481_v62 }
 0x7d3   :  { %2244 = shalt.err (!%p2241_p4)
}
 0x7d4   :  { %s2245_s28 = scalar_lea.hbm %s2748_s11, 384 }
 0x7d5   :  { %p2246_p5 = scmp.ne.s32.totalorder %s2748_s11, %s2245_s28  ;;  %p2249_p6 = scmp.lt.u32.totalorder %s2245_s28, %s2748_s11 }
 0x7d7   :  { %p2251_p7 = pnand %p2249_p6, %p2246_p5 }
 0x7d9   :  { %2254 = shalt.err (!%p2251_p7)
}
 0x7da   :  { %1506 = dma.vmem_to_hbm [thread:$0]  %s1504_s10, 384, %s2748_s11, [#allocation7]  }
 0x7db   :  { %s2255_s0 = scalar_lea.vmem %s1516_s15, 128  ;;  %p2260_p9 = scmp.lt.s32.totalorder %s1516_s15, %s1516_s15 }
 0x7dc   :  { %p2256_p8 = scmp.ne.s32.totalorder %s1516_s15, %s2255_s0  ;;  %p2261_p10 = scmp.lt.s32.totalorder %s2255_s0, %s2255_s0 }
 0x7de   :  { %p2262_p11 = por %p2261_p10, %p2260_p9 }
 0x7e0   :  { %p2263_p12 = pnand %p2262_p11, %p2256_p8 }
 0x7e2   :  { %2266 = shalt.err (!%p2263_p12)
}
 0x7e3   :  { %s2267_s25 = scalar_lea.hbm %s2750_s13, 128 }
 0x7e4   :  { %p2268_p13 = scmp.ne.s32.totalorder %s2750_s13, %s2267_s25  ;;  %p2271_p0 = scmp.lt.u32.totalorder %s2267_s25, %s2750_s13 }
 0x7e6   :  { %p2273_p1 = pnand %p2271_p0, %p2268_p13 }
 0x7e8   :  { %2276 = shalt.err (!%p2273_p1)
}
 0x7e9   :  { %1518 = dma.vmem_to_hbm [thread:$0]  %s1516_s15, 128, %s2750_s13, [#allocation19]   ;;  %v1463_v54 = vmul.f32 1.442695, %v1462_v39  ;;  %v1461_v57 = vld [vmem:[#allocation4] sm:$0xff]  ;;  %v1491_v7 = vld [vmem:[#allocation3] sm:$0xff] }
 0x7eb   :  { %2075 = vpow2.f32 %v1463_v54 }
 0x7f5   :  { %v2076_v56 = vpop.eup %2075 }
 0x7f6   :  { %v1465_v60 = vmul.f32 %v2076_v56, %v1461_v57 }
 0x85f   :  { %v1483_v61 = vpop.xlane.xlu1 %1482 }
 0x860   :  { %v1484_v63 = vadd.f32 %v1483_v61, %v1465_v60 }
 0x862   :  { %1486 = vst.msk [vmem:[#allocation4] sm:$0xff] %vm1242_vm9, %v1484_v63 }
 0x869   :  { %v1492_v4 = vld [vmem:[#allocation4] sm:$0xff] }
 0x86a   :  { %2077 = vlog2.f32 %v1492_v4 }
 0x874   :  { %v2078_v5 = vpop.eup %2077 }
 0x875   :  { %v1494_v3 = vmul.f32 0.6931472, %v2078_v5 }
 0x877   :  { %v1495_v9 = vadd.f32 %v1494_v3, %v1491_v7 }
 0x879   :  { %1496 = vst.msk [vmem:[%s2749_s12] sm:$0xff] %vm1242_vm9, %v1495_v9 }
 0x87a   :  { %2285 = dma.done.wait [#allocation7], 384  }
 0x87b   :  { %2286 = vsyncadd [#allocation7], 4294966912 }
 0x87c   :  { %2287 = dma.done.wait [#allocation19], 128  }
 0x87d   :  { %2288 = vsyncadd [#allocation19], 4294967168 }
 0x87e   :  { %1527 = vsyncpa [#allocation6], 1 }
 0x87f   :  { %1528 = vsyncpa [#allocation9], 1 }
 0x880   :  { %1529 = vsyncpa [#allocation12], 1 }
 0x881   :  { %1530 = vsyncpa [#allocation15], 1 }
 0x882   :  { %1531 = vsyncpa [#allocation7], 1 }
 0x883   :  { %1532 = vsyncpa [#allocation19], 1 }

</bundles_post_ra>
